<compile_context>
chip_gen: v6e
topology: v6e:2x2x1
jax: 0.10.0
libtpu: 0.0.40
codegen_flags: <defaults>
</compile_context>

<pallas_src>
from functools import partial

import numpy as np
import jax
import jax.numpy as jnp
from jax.experimental import pallas as pl
from jax.experimental.pallas import tpu as pltpu


# ----------------------------------------------------------------------------
# Weight construction (identical to the torch __init__)
# ----------------------------------------------------------------------------
def make_soft_dilate_weight(kernel_size: int) -> np.ndarray:
    r = kernel_size // 2
    y_idx, x_idx = np.meshgrid(
        np.arange(kernel_size, dtype=np.float32),
        np.arange(kernel_size, dtype=np.float32),
        indexing="ij",
    )
    dist = np.sqrt((x_idx - r) ** 2 + (y_idx - r) ** 2)
    kernel = dist.max() - dist
    kernel /= kernel.sum()
    return kernel.astype(np.float32)  # (K, K)


def make_banded_weight(weight: np.ndarray, wt: int, wt_p: int) -> np.ndarray:
    """Shared per-width-tile banded matrices: B[di, p, j] = weight[di, p - j].

    For output columns j in [0, wt) of a width tile whose padded columns start
    at wt0, kernel-row di contributes xp[:, i+di, wt0:wt0+wt_p] @ B[di], so the
    full 15x15 conv is K MXU matmuls against one small constant RHS reused for
    every width tile.  Rows p >= wt + 2r are zero, so the extra (lane-padding
    or next-tile) columns of the lhs slice contribute nothing.
    """
    k = weight.shape[0]
    b = np.zeros((k, wt_p, wt), np.float32)
    j = np.arange(wt)
    for di in range(k):
        for dj in range(k):
            b[di, j + dj, j] = weight[di, dj]
    return b


# ----------------------------------------------------------------------------
# Tiling helpers
# ----------------------------------------------------------------------------
def _round_up(v: int, m: int) -> int:
    return ((v + m - 1) // m) * m


def _pick_width_tile(w: int) -> int:
    """128-wide output tiles (lane-dense stores, 256 contraction) when possible."""
    return 128 if (w % 128 == 0) else w


def _pick_row_tile(h: int) -> int:
    """Rows per grid step; must divide H and keep the store sublane-aligned."""
    for rt in (128, 64, 32, 16, 8):
        if h % rt == 0:
            return rt
    return h


def _make_row_strips(x_nchw, r, rt, wp_pad):
    """Reflect-pad and rearrange into overlapping row strips.

    Returns (nb, n_rt, rt + 2r, wp_pad) f32.  Strip rb holds padded rows
    [rb*rt, rb*rt + rt + 2r); the 2r-row overlap (~11% extra HBM) is what lets
    the Pallas grid use plain non-overlapping Blocked specs over rows.
    XLA fuses the pad + stack into a single fusion.
    """
    n, c, h, w = x_nchw.shape
    nb, hp, wp = n * c, h + 2 * r, w + 2 * r
    xp = jnp.pad(x_nchw, ((0, 0), (0, 0), (r, r), (r, r)), mode="reflect")
    xp = xp.reshape(nb, hp, wp)
    if wp_pad > wp:
        xp = jnp.pad(xp, ((0, 0), (0, 0), (0, wp_pad - wp)))
    n_rt = h // rt
    strips = jnp.stack(
        [xp[:, i * rt:i * rt + rt + 2 * r, :] for i in range(n_rt)], axis=1)
    return strips


# ----------------------------------------------------------------------------
# Kernels
# ----------------------------------------------------------------------------
def _band_conv_tile(x_ref, b_ref, t, *, k, rt, wt, wt_p):
    """Conv of one (rt, wt) output tile via K banded MXU matmuls (f32 acc)."""
    wt0 = t * wt
    acc = jnp.zeros((rt, wt), jnp.float32)
    for di in range(k):
        lhs = x_ref[0, 0, di:di + rt, wt0:wt0 + wt_p].astype(jnp.bfloat16)
        acc = acc + jnp.dot(lhs, b_ref[di],
                            preferred_element_type=jnp.float32)
    return acc


def _blur_kernel(x_ref, b_ref, y_ref, bmax_ref, *, k, rt, wt, wt_p, n_wt,
                 threshold):
    """Blur (MXU) + y = 1 - conv + per-grid-step max(y[y < thr]).

    x_ref   : (1, 1, rt + 2r, wp_pad)  f32  reflect-padded row strip
    b_ref   : (k, wt_p, wt)            bf16 shared banded weight matrices
    y_ref   : (1, rt, W)               f32  output rows (lane-dense stores)
    bmax_ref: (1, 1, 8, 128)           f32  per-step masked max (broadcast)
    """
    neg_inf = jnp.float32(-jnp.inf)
    run_max = jnp.full((rt, wt), neg_inf, jnp.float32)  # elementwise (VPU)
    for t in range(n_wt):
        acc = _band_conv_tile(x_ref, b_ref, t, k=k, rt=rt, wt=wt, wt_p=wt_p)
        y_tile = 1.0 - acc
        run_max = jnp.maximum(run_max,
                              jnp.where(y_tile < threshold, y_tile, neg_inf))
        y_ref[0, :, t * wt:(t + 1) * wt] = y_tile
    # Single cross-lane reduce per grid step.
    bmax_ref[...] = jnp.broadcast_to(jnp.max(run_max), bmax_ref.shape)


def _erode_kernel(x_ref, b_ref, o_ref, *, k, r, rt, wt, wt_p, n_wt):
    """One soft-erode step: out = min(x, blur(x)), min fused into the kernel."""
    for t in range(n_wt):
        wt0 = t * wt
        acc = _band_conv_tile(x_ref, b_ref, t, k=k, rt=rt, wt=wt, wt_p=wt_p)
        center = x_ref[0, 0, r:r + rt, wt0 + r:wt0 + r + wt]  # full-precision x
        o_ref[0, :, wt0:wt0 + wt] = jnp.minimum(center, acc)


def _normalize_kernel(scale_ref, y_ref, x_ref, *, threshold):
    """x = where(y >= thr, 1, y * (1 / max(y[y < thr])))."""
    y = y_ref[...]
    inv_m = scale_ref[0, 0]
    x_ref[...] = jnp.where(y >= threshold, 1.0, y * inv_m)


# ----------------------------------------------------------------------------
# Pallas wrappers
# ----------------------------------------------------------------------------
def _blur_pass(xs, banded, *, h, w, rt, wt, wt_p, threshold):
    nb, n_rt, rt2r, wp_pad = xs.shape
    k = banded.shape[0]
    n_wt = w // wt
    return pl.pallas_call(
        partial(_blur_kernel, k=k, rt=rt, wt=wt, wt_p=wt_p, n_wt=n_wt,
                threshold=float(threshold)),
        out_shape=(
            jax.ShapeDtypeStruct((nb, h, w), jnp.float32),
            jax.ShapeDtypeStruct((nb, n_rt, 8, 128), jnp.float32),
        ),
        grid=(nb, n_rt),
        in_specs=[
            pl.BlockSpec((1, 1, rt2r, wp_pad), lambda b, rb: (b, rb, 0, 0)),
            # Constant index map: the small shared banded matrix is fetched
            # once (≈1 MB bf16); double-buffering it is negligible now.
            pl.BlockSpec((k, wt_p, wt), lambda b, rb: (0, 0, 0)),
        ],
        out_specs=(
            pl.BlockSpec((1, rt, w), lambda b, rb: (b, rb, 0)),
            pl.BlockSpec((1, 1, 8, 128), lambda b, rb: (b, rb, 0, 0)),
        ),
        compiler_params=pltpu.CompilerParams(
            dimension_semantics=("parallel", "parallel"),
            vmem_limit_bytes=32 * 1024 * 1024,
        ),
    )(xs, banded)


def _erode_pass(xs, banded, *, h, w, r, rt, wt, wt_p):
    nb, n_rt, rt2r, wp_pad = xs.shape
    k = banded.shape[0]
    n_wt = w // wt
    return pl.pallas_call(
        partial(_erode_kernel, k=k, r=r, rt=rt, wt=wt, wt_p=wt_p, n_wt=n_wt),
        out_shape=jax.ShapeDtypeStruct((nb, h, w), jnp.float32),
        grid=(nb, n_rt),
        in_specs=[
            pl.BlockSpec((1, 1, rt2r, wp_pad), lambda b, rb: (b, rb, 0, 0)),
            pl.BlockSpec((k, wt_p, wt), lambda b, rb: (0, 0, 0)),
        ],
        out_specs=pl.BlockSpec((1, rt, w), lambda b, rb: (b, rb, 0)),
        compiler_params=pltpu.CompilerParams(
            dimension_semantics=("parallel", "parallel"),
            vmem_limit_bytes=32 * 1024 * 1024,
        ),
    )(xs, banded)


def _normalize_pass(y, inv_m, threshold, rt):
    nb, h, w = y.shape
    n_rt = h // rt
    return pl.pallas_call(
        partial(_normalize_kernel, threshold=float(threshold)),
        out_shape=jax.ShapeDtypeStruct((nb, h, w), jnp.float32),
        grid=(nb, n_rt),
        in_specs=[
            pl.BlockSpec(memory_space=pltpu.MemorySpace.SMEM),  # 1/max scalar
            pl.BlockSpec((1, rt, w), lambda b, rb: (b, rb, 0)),
        ],
        out_specs=pl.BlockSpec((1, rt, w), lambda b, rb: (b, rb, 0)),
        compiler_params=pltpu.CompilerParams(
            dimension_semantics=("parallel", "parallel"),
        ),
    )(inv_m, y)


# ----------------------------------------------------------------------------
# Public forward pass
# ----------------------------------------------------------------------------
def soft_dilate(x_ori, kernel_size=15, threshold=0.6, iterations=1):
    """JAX/Pallas equivalent of SoftDilate.forward. Returns (x, y)."""
    r = kernel_size // 2
    n, c, h, w = x_ori.shape

    wt = _pick_width_tile(w)                  # output-width tile (lane dense)
    wt_p = _round_up(wt + 2 * r, 128)         # contraction dim (MXU aligned)
    wp_pad = _round_up(w + 2 * r, 128)        # padded input width (zero fill)
    rt = _pick_row_tile(h)                    # rows per grid step

    weight = make_soft_dilate_weight(kernel_size)
    banded = jnp.asarray(make_banded_weight(weight, wt, wt_p),
                         dtype=jnp.bfloat16)  # bf16 MXU operand

    x = (1.0 - x_ori).astype(jnp.float32)

    # (iterations - 1) soft-erode steps: x = min(x, blur(x)), fused in-kernel.
    for _ in range(iterations - 1):
        xs = _make_row_strips(x, r, rt, wp_pad)
        x = _erode_pass(xs, banded, h=h, w=w, r=r, rt=rt, wt=wt,
                        wt_p=wt_p).reshape(n, c, h, w)
        # TODO(synk): fuse the reflect re-pad of the erode output into the
        # kernel (emit padded halo rows directly) to avoid one extra XLA pad
        # round trip per iteration.

    # Final blur fused with y = 1 - conv and per-step max(y[y < thr]).
    xs = _make_row_strips(x, r, rt, wp_pad)
    y, bmax = _blur_pass(xs, banded, h=h, w=w, rt=rt, wt=wt, wt_p=wt_p,
                         threshold=threshold)

    # Global max of the below-threshold set (tiny reduction in XLA).
    # NOTE: if no element is below threshold, torch would raise on an empty
    # max; here m = -inf and x becomes all ones (the divide branch is never
    # selected).  If m == 0 the result is inf/NaN in both frameworks.
    m = jnp.max(bmax)
    inv_m = (1.0 / m).reshape(1, 1).astype(jnp.float32)

    x_out = _normalize_pass(y, inv_m, threshold, rt)

    # TODO(synk): torch.cuda.empty_cache() has no JAX/Pallas equivalent (no-op).
    return x_out.reshape(n, c, h, w), y.reshape(n, c, h, w)


# ----------------------------------------------------------------------------
# Pure-JAX reference (for correctness check only)
# ----------------------------------------------------------------------------
@partial(jax.jit, static_argnums=(1, 2))
def _reference_soft_dilate_y(x_ori, kernel_size, iterations):
    r = kernel_size // 2
    wgt = jnp.asarray(make_soft_dilate_weight(kernel_size))
    x = (1.0 - x_ori).astype(jnp.float32)
    h, w = x.shape[-2], x.shape[-1]

    def blur(z):
        zp = jnp.pad(z, ((0, 0), (0, 0), (r, r), (r, r)), mode="reflect")
        out = jnp.zeros_like(z)
        for di in range(kernel_size):
            for dj in range(kernel_size):
                out = out + wgt[di, dj] * zp[:, :, di:di + h, dj:dj + w]
        return out

    for _ in range(iterations - 1):
        x = jnp.minimum(x, blur(x))
    return 1.0 - blur(x)


if __name__ == "__main__":
    key = jax.random.PRNGKey(0)
    # Single-channel soft mask in [0, 1), NCHW (C must be 1 for this module).
    x_ori = jax.random.uniform(key, (2, 1, 16, 16), dtype=jnp.float32)

    # iterations=1 (module default)
    x, y = soft_dilate(x_ori, kernel_size=15, threshold=0.6, iterations=1)
    jax.block_until_ready((x, y))

    assert x.shape == x_ori.shape and y.shape == x_ori.shape
    assert x.dtype == jnp.float32 and y.dtype == jnp.float32

    y_ref = _reference_soft_dilate_y(x_ori, 15, 1)
    err = float(jnp.max(jnp.abs(y - y_ref)))
    assert err < 5e-3, f"y mismatch vs reference: {err}"

    # Post-process consistency (torch-equivalent masking / normalization
    # recomputed from the kernel's own y, so threshold-boundary pixels agree).
    m_k = jnp.max(jnp.where(y < 0.6, y, -jnp.inf))
    x_exp = jnp.where(y >= 0.6, 1.0, y / m_k)
    errx = float(jnp.max(jnp.abs(x - x_exp)))
    assert errx < 1e-5, f"x mismatch vs post-process reference: {errx}"
    assert float(jnp.min(x)) >= -1e-3 and float(jnp.max(x)) <= 1.0 + 1e-3

    # iterations=2 exercises the fused erode (min) path as well.
    x2, y2 = soft_dilate(x_ori, kernel_size=15, threshold=0.6, iterations=2)
    jax.block_until_ready((x2, y2))
    y2_ref = _reference_soft_dilate_y(x_ori, 15, 2)
    err2 = float(jnp.max(jnp.abs(y2 - y2_ref)))
    assert err2 < 5e-3, f"y mismatch vs reference (iterations=2): {err2}"

    print("KERNEL_OK")
</pallas_src>

<mosaic_0001>
module attributes {stable_mosaic.version = 11 : i64} {
  func.func @_blur_kernel(%arg0: i32, %arg1: i32, %arg2: memref<1x1x30x128xf32, #tpu.memory_space<vmem>>, %arg3: memref<15x128x16xbf16, #tpu.memory_space<vmem>>, %arg4: memref<1x16x16xf32, #tpu.memory_space<vmem>>, %arg5: memref<1x1x8x128xf32, #tpu.memory_space<vmem>>) attributes {dimension_semantics = [#tpu.dimension_semantics<parallel>, #tpu.dimension_semantics<parallel>], iteration_bounds = array<i64: 2, 1>, scalar_prefetch = 0 : i64, scratch_operands = 0 : i64, tpu.core_type = #tpu.core_type<tc>, window_params = [{transform_indices = @transform_0, window_bounds = array<i64: 1, 1, 30, 128>}, {pipeline_mode = #tpu.pipeline_mode<synchronous>, transform_indices = @transform_1, window_bounds = array<i64: 15, 128, 16>}, {transform_indices = @transform_2, window_bounds = array<i64: 1, 16, 16>}, {transform_indices = @transform_3, window_bounds = array<i64: 1, 1, 8, 128>}]} {
    %cst = arith.constant 0xFF800000 : f32
    %0 = vector.broadcast %cst : f32 to vector<16x16xf32>
    %cst_0 = arith.constant 0.000000e+00 : f32
    %1 = vector.broadcast %cst_0 : f32 to vector<16x16xf32>
    %c0 = arith.constant 0 : index
    %c0_1 = arith.constant 0 : index
    %c0_2 = arith.constant 0 : index
    %c0_3 = arith.constant 0 : index
    %2 = vector.load %arg2[%c0, %c0_1, %c0_2, %c0_3] : memref<1x1x30x128xf32, #tpu.memory_space<vmem>>, vector<1x1x16x128xf32>
    %3 = vector.shape_cast %2 : vector<1x1x16x128xf32> to vector<16x128xf32>
    %4 = arith.truncf %3 : vector<16x128xf32> to vector<16x128xbf16>
    %c0_4 = arith.constant 0 : index
    %c0_5 = arith.constant 0 : index
    %c0_6 = arith.constant 0 : index
    %5 = vector.load %arg3[%c0_4, %c0_5, %c0_6] : memref<15x128x16xbf16, #tpu.memory_space<vmem>>, vector<1x128x16xbf16>
    %6 = vector.shape_cast %5 : vector<1x128x16xbf16> to vector<128x16xbf16>
    %cst_7 = arith.constant dense<0.000000e+00> : vector<16x16xf32>
    %7 = tpu.matmul %4, %6, %cst_7 {dimension_numbers = #tpu.dot_dimension_numbers<[1], [0], [0], [1], [0, 0, 1, 1], [], []>} : vector<16x128xbf16>, vector<128x16xbf16>, vector<16x16xf32> -> vector<16x16xf32>
    %8 = arith.addf %1, %7 : vector<16x16xf32>
    %c0_8 = arith.constant 0 : index
    %c0_9 = arith.constant 0 : index
    %c1 = arith.constant 1 : index
    %c0_10 = arith.constant 0 : index
    %9 = vector.load %arg2[%c0_8, %c0_9, %c1, %c0_10] : memref<1x1x30x128xf32, #tpu.memory_space<vmem>>, vector<1x1x16x128xf32>
    %10 = vector.shape_cast %9 : vector<1x1x16x128xf32> to vector<16x128xf32>
    %11 = arith.truncf %10 : vector<16x128xf32> to vector<16x128xbf16>
    %c1_11 = arith.constant 1 : index
    %c0_12 = arith.constant 0 : index
    %c0_13 = arith.constant 0 : index
    %12 = vector.load %arg3[%c1_11, %c0_12, %c0_13] : memref<15x128x16xbf16, #tpu.memory_space<vmem>>, vector<1x128x16xbf16>
    %13 = vector.shape_cast %12 : vector<1x128x16xbf16> to vector<128x16xbf16>
    %cst_14 = arith.constant dense<0.000000e+00> : vector<16x16xf32>
    %14 = tpu.matmul %11, %13, %cst_14 {dimension_numbers = #tpu.dot_dimension_numbers<[1], [0], [0], [1], [0, 0, 1, 1], [], []>} : vector<16x128xbf16>, vector<128x16xbf16>, vector<16x16xf32> -> vector<16x16xf32>
    %15 = arith.addf %8, %14 : vector<16x16xf32>
    %c0_15 = arith.constant 0 : index
    %c0_16 = arith.constant 0 : index
    %c2 = arith.constant 2 : index
    %c0_17 = arith.constant 0 : index
    %16 = vector.load %arg2[%c0_15, %c0_16, %c2, %c0_17] : memref<1x1x30x128xf32, #tpu.memory_space<vmem>>, vector<1x1x16x128xf32>
    %17 = vector.shape_cast %16 : vector<1x1x16x128xf32> to vector<16x128xf32>
    %18 = arith.truncf %17 : vector<16x128xf32> to vector<16x128xbf16>
    %c2_18 = arith.constant 2 : index
    %c0_19 = arith.constant 0 : index
    %c0_20 = arith.constant 0 : index
    %19 = vector.load %arg3[%c2_18, %c0_19, %c0_20] : memref<15x128x16xbf16, #tpu.memory_space<vmem>>, vector<1x128x16xbf16>
    %20 = vector.shape_cast %19 : vector<1x128x16xbf16> to vector<128x16xbf16>
    %cst_21 = arith.constant dense<0.000000e+00> : vector<16x16xf32>
    %21 = tpu.matmul %18, %20, %cst_21 {dimension_numbers = #tpu.dot_dimension_numbers<[1], [0], [0], [1], [0, 0, 1, 1], [], []>} : vector<16x128xbf16>, vector<128x16xbf16>, vector<16x16xf32> -> vector<16x16xf32>
    %22 = arith.addf %15, %21 : vector<16x16xf32>
    %c0_22 = arith.constant 0 : index
    %c0_23 = arith.constant 0 : index
    %c3 = arith.constant 3 : index
    %c0_24 = arith.constant 0 : index
    %23 = vector.load %arg2[%c0_22, %c0_23, %c3, %c0_24] : memref<1x1x30x128xf32, #tpu.memory_space<vmem>>, vector<1x1x16x128xf32>
    %24 = vector.shape_cast %23 : vector<1x1x16x128xf32> to vector<16x128xf32>
    %25 = arith.truncf %24 : vector<16x128xf32> to vector<16x128xbf16>
    %c3_25 = arith.constant 3 : index
    %c0_26 = arith.constant 0 : index
    %c0_27 = arith.constant 0 : index
    %26 = vector.load %arg3[%c3_25, %c0_26, %c0_27] : memref<15x128x16xbf16, #tpu.memory_space<vmem>>, vector<1x128x16xbf16>
    %27 = vector.shape_cast %26 : vector<1x128x16xbf16> to vector<128x16xbf16>
    %cst_28 = arith.constant dense<0.000000e+00> : vector<16x16xf32>
    %28 = tpu.matmul %25, %27, %cst_28 {dimension_numbers = #tpu.dot_dimension_numbers<[1], [0], [0], [1], [0, 0, 1, 1], [], []>} : vector<16x128xbf16>, vector<128x16xbf16>, vector<16x16xf32> -> vector<16x16xf32>
    %29 = arith.addf %22, %28 : vector<16x16xf32>
    %c0_29 = arith.constant 0 : index
    %c0_30 = arith.constant 0 : index
    %c4 = arith.constant 4 : index
    %c0_31 = arith.constant 0 : index
    %30 = vector.load %arg2[%c0_29, %c0_30, %c4, %c0_31] : memref<1x1x30x128xf32, #tpu.memory_space<vmem>>, vector<1x1x16x128xf32>
    %31 = vector.shape_cast %30 : vector<1x1x16x128xf32> to vector<16x128xf32>
    %32 = arith.truncf %31 : vector<16x128xf32> to vector<16x128xbf16>
    %c4_32 = arith.constant 4 : index
    %c0_33 = arith.constant 0 : index
    %c0_34 = arith.constant 0 : index
    %33 = vector.load %arg3[%c4_32, %c0_33, %c0_34] : memref<15x128x16xbf16, #tpu.memory_space<vmem>>, vector<1x128x16xbf16>
    %34 = vector.shape_cast %33 : vector<1x128x16xbf16> to vector<128x16xbf16>
    %cst_35 = arith.constant dense<0.000000e+00> : vector<16x16xf32>
    %35 = tpu.matmul %32, %34, %cst_35 {dimension_numbers = #tpu.dot_dimension_numbers<[1], [0], [0], [1], [0, 0, 1, 1], [], []>} : vector<16x128xbf16>, vector<128x16xbf16>, vector<16x16xf32> -> vector<16x16xf32>
    %36 = arith.addf %29, %35 : vector<16x16xf32>
    %c0_36 = arith.constant 0 : index
    %c0_37 = arith.constant 0 : index
    %c5 = arith.constant 5 : index
    %c0_38 = arith.constant 0 : index
    %37 = vector.load %arg2[%c0_36, %c0_37, %c5, %c0_38] : memref<1x1x30x128xf32, #tpu.memory_space<vmem>>, vector<1x1x16x128xf32>
    %38 = vector.shape_cast %37 : vector<1x1x16x128xf32> to vector<16x128xf32>
    %39 = arith.truncf %38 : vector<16x128xf32> to vector<16x128xbf16>
    %c5_39 = arith.constant 5 : index
    %c0_40 = arith.constant 0 : index
    %c0_41 = arith.constant 0 : index
    %40 = vector.load %arg3[%c5_39, %c0_40, %c0_41] : memref<15x128x16xbf16, #tpu.memory_space<vmem>>, vector<1x128x16xbf16>
    %41 = vector.shape_cast %40 : vector<1x128x16xbf16> to vector<128x16xbf16>
    %cst_42 = arith.constant dense<0.000000e+00> : vector<16x16xf32>
    %42 = tpu.matmul %39, %41, %cst_42 {dimension_numbers = #tpu.dot_dimension_numbers<[1], [0], [0], [1], [0, 0, 1, 1], [], []>} : vector<16x128xbf16>, vector<128x16xbf16>, vector<16x16xf32> -> vector<16x16xf32>
    %43 = arith.addf %36, %42 : vector<16x16xf32>
    %c0_43 = arith.constant 0 : index
    %c0_44 = arith.constant 0 : index
    %c6 = arith.constant 6 : index
    %c0_45 = arith.constant 0 : index
    %44 = vector.load %arg2[%c0_43, %c0_44, %c6, %c0_45] : memref<1x1x30x128xf32, #tpu.memory_space<vmem>>, vector<1x1x16x128xf32>
    %45 = vector.shape_cast %44 : vector<1x1x16x128xf32> to vector<16x128xf32>
    %46 = arith.truncf %45 : vector<16x128xf32> to vector<16x128xbf16>
    %c6_46 = arith.constant 6 : index
    %c0_47 = arith.constant 0 : index
    %c0_48 = arith.constant 0 : index
    %47 = vector.load %arg3[%c6_46, %c0_47, %c0_48] : memref<15x128x16xbf16, #tpu.memory_space<vmem>>, vector<1x128x16xbf16>
    %48 = vector.shape_cast %47 : vector<1x128x16xbf16> to vector<128x16xbf16>
    %cst_49 = arith.constant dense<0.000000e+00> : vector<16x16xf32>
    %49 = tpu.matmul %46, %48, %cst_49 {dimension_numbers = #tpu.dot_dimension_numbers<[1], [0], [0], [1], [0, 0, 1, 1], [], []>} : vector<16x128xbf16>, vector<128x16xbf16>, vector<16x16xf32> -> vector<16x16xf32>
    %50 = arith.addf %43, %49 : vector<16x16xf32>
    %c0_50 = arith.constant 0 : index
    %c0_51 = arith.constant 0 : index
    %c7 = arith.constant 7 : index
    %c0_52 = arith.constant 0 : index
    %51 = vector.load %arg2[%c0_50, %c0_51, %c7, %c0_52] : memref<1x1x30x128xf32, #tpu.memory_space<vmem>>, vector<1x1x16x128xf32>
    %52 = vector.shape_cast %51 : vector<1x1x16x128xf32> to vector<16x128xf32>
    %53 = arith.truncf %52 : vector<16x128xf32> to vector<16x128xbf16>
    %c7_53 = arith.constant 7 : index
    %c0_54 = arith.constant 0 : index
    %c0_55 = arith.constant 0 : index
    %54 = vector.load %arg3[%c7_53, %c0_54, %c0_55] : memref<15x128x16xbf16, #tpu.memory_space<vmem>>, vector<1x128x16xbf16>
    %55 = vector.shape_cast %54 : vector<1x128x16xbf16> to vector<128x16xbf16>
    %cst_56 = arith.constant dense<0.000000e+00> : vector<16x16xf32>
    %56 = tpu.matmul %53, %55, %cst_56 {dimension_numbers = #tpu.dot_dimension_numbers<[1], [0], [0], [1], [0, 0, 1, 1], [], []>} : vector<16x128xbf16>, vector<128x16xbf16>, vector<16x16xf32> -> vector<16x16xf32>
    %57 = arith.addf %50, %56 : vector<16x16xf32>
    %c0_57 = arith.constant 0 : index
    %c0_58 = arith.constant 0 : index
    %c8 = arith.constant 8 : index
    %c0_59 = arith.constant 0 : index
    %58 = vector.load %arg2[%c0_57, %c0_58, %c8, %c0_59] : memref<1x1x30x128xf32, #tpu.memory_space<vmem>>, vector<1x1x16x128xf32>
    %59 = vector.shape_cast %58 : vector<1x1x16x128xf32> to vector<16x128xf32>
    %60 = arith.truncf %59 : vector<16x128xf32> to vector<16x128xbf16>
    %c8_60 = arith.constant 8 : index
    %c0_61 = arith.constant 0 : index
    %c0_62 = arith.constant 0 : index
    %61 = vector.load %arg3[%c8_60, %c0_61, %c0_62] : memref<15x128x16xbf16, #tpu.memory_space<vmem>>, vector<1x128x16xbf16>
    %62 = vector.shape_cast %61 : vector<1x128x16xbf16> to vector<128x16xbf16>
    %cst_63 = arith.constant dense<0.000000e+00> : vector<16x16xf32>
    %63 = tpu.matmul %60, %62, %cst_63 {dimension_numbers = #tpu.dot_dimension_numbers<[1], [0], [0], [1], [0, 0, 1, 1], [], []>} : vector<16x128xbf16>, vector<128x16xbf16>, vector<16x16xf32> -> vector<16x16xf32>
    %64 = arith.addf %57, %63 : vector<16x16xf32>
    %c0_64 = arith.constant 0 : index
    %c0_65 = arith.constant 0 : index
    %c9 = arith.constant 9 : index
    %c0_66 = arith.constant 0 : index
    %65 = vector.load %arg2[%c0_64, %c0_65, %c9, %c0_66] : memref<1x1x30x128xf32, #tpu.memory_space<vmem>>, vector<1x1x16x128xf32>
    %66 = vector.shape_cast %65 : vector<1x1x16x128xf32> to vector<16x128xf32>
    %67 = arith.truncf %66 : vector<16x128xf32> to vector<16x128xbf16>
    %c9_67 = arith.constant 9 : index
    %c0_68 = arith.constant 0 : index
    %c0_69 = arith.constant 0 : index
    %68 = vector.load %arg3[%c9_67, %c0_68, %c0_69] : memref<15x128x16xbf16, #tpu.memory_space<vmem>>, vector<1x128x16xbf16>
    %69 = vector.shape_cast %68 : vector<1x128x16xbf16> to vector<128x16xbf16>
    %cst_70 = arith.constant dense<0.000000e+00> : vector<16x16xf32>
    %70 = tpu.matmul %67, %69, %cst_70 {dimension_numbers = #tpu.dot_dimension_numbers<[1], [0], [0], [1], [0, 0, 1, 1], [], []>} : vector<16x128xbf16>, vector<128x16xbf16>, vector<16x16xf32> -> vector<16x16xf32>
    %71 = arith.addf %64, %70 : vector<16x16xf32>
    %c0_71 = arith.constant 0 : index
    %c0_72 = arith.constant 0 : index
    %c10 = arith.constant 10 : index
    %c0_73 = arith.constant 0 : index
    %72 = vector.load %arg2[%c0_71, %c0_72, %c10, %c0_73] : memref<1x1x30x128xf32, #tpu.memory_space<vmem>>, vector<1x1x16x128xf32>
    %73 = vector.shape_cast %72 : vector<1x1x16x128xf32> to vector<16x128xf32>
    %74 = arith.truncf %73 : vector<16x128xf32> to vector<16x128xbf16>
    %c10_74 = arith.constant 10 : index
    %c0_75 = arith.constant 0 : index
    %c0_76 = arith.constant 0 : index
    %75 = vector.load %arg3[%c10_74, %c0_75, %c0_76] : memref<15x128x16xbf16, #tpu.memory_space<vmem>>, vector<1x128x16xbf16>
    %76 = vector.shape_cast %75 : vector<1x128x16xbf16> to vector<128x16xbf16>
    %cst_77 = arith.constant dense<0.000000e+00> : vector<16x16xf32>
    %77 = tpu.matmul %74, %76, %cst_77 {dimension_numbers = #tpu.dot_dimension_numbers<[1], [0], [0], [1], [0, 0, 1, 1], [], []>} : vector<16x128xbf16>, vector<128x16xbf16>, vector<16x16xf32> -> vector<16x16xf32>
    %78 = arith.addf %71, %77 : vector<16x16xf32>
    %c0_78 = arith.constant 0 : index
    %c0_79 = arith.constant 0 : index
    %c11 = arith.constant 11 : index
    %c0_80 = arith.constant 0 : index
    %79 = vector.load %arg2[%c0_78, %c0_79, %c11, %c0_80] : memref<1x1x30x128xf32, #tpu.memory_space<vmem>>, vector<1x1x16x128xf32>
    %80 = vector.shape_cast %79 : vector<1x1x16x128xf32> to vector<16x128xf32>
    %81 = arith.truncf %80 : vector<16x128xf32> to vector<16x128xbf16>
    %c11_81 = arith.constant 11 : index
    %c0_82 = arith.constant 0 : index
    %c0_83 = arith.constant 0 : index
    %82 = vector.load %arg3[%c11_81, %c0_82, %c0_83] : memref<15x128x16xbf16, #tpu.memory_space<vmem>>, vector<1x128x16xbf16>
    %83 = vector.shape_cast %82 : vector<1x128x16xbf16> to vector<128x16xbf16>
    %cst_84 = arith.constant dense<0.000000e+00> : vector<16x16xf32>
    %84 = tpu.matmul %81, %83, %cst_84 {dimension_numbers = #tpu.dot_dimension_numbers<[1], [0], [0], [1], [0, 0, 1, 1], [], []>} : vector<16x128xbf16>, vector<128x16xbf16>, vector<16x16xf32> -> vector<16x16xf32>
    %85 = arith.addf %78, %84 : vector<16x16xf32>
    %c0_85 = arith.constant 0 : index
    %c0_86 = arith.constant 0 : index
    %c12 = arith.constant 12 : index
    %c0_87 = arith.constant 0 : index
    %86 = vector.load %arg2[%c0_85, %c0_86, %c12, %c0_87] : memref<1x1x30x128xf32, #tpu.memory_space<vmem>>, vector<1x1x16x128xf32>
    %87 = vector.shape_cast %86 : vector<1x1x16x128xf32> to vector<16x128xf32>
    %88 = arith.truncf %87 : vector<16x128xf32> to vector<16x128xbf16>
    %c12_88 = arith.constant 12 : index
    %c0_89 = arith.constant 0 : index
    %c0_90 = arith.constant 0 : index
    %89 = vector.load %arg3[%c12_88, %c0_89, %c0_90] : memref<15x128x16xbf16, #tpu.memory_space<vmem>>, vector<1x128x16xbf16>
    %90 = vector.shape_cast %89 : vector<1x128x16xbf16> to vector<128x16xbf16>
    %cst_91 = arith.constant dense<0.000000e+00> : vector<16x16xf32>
    %91 = tpu.matmul %88, %90, %cst_91 {dimension_numbers = #tpu.dot_dimension_numbers<[1], [0], [0], [1], [0, 0, 1, 1], [], []>} : vector<16x128xbf16>, vector<128x16xbf16>, vector<16x16xf32> -> vector<16x16xf32>
    %92 = arith.addf %85, %91 : vector<16x16xf32>
    %c0_92 = arith.constant 0 : index
    %c0_93 = arith.constant 0 : index
    %c13 = arith.constant 13 : index
    %c0_94 = arith.constant 0 : index
    %93 = vector.load %arg2[%c0_92, %c0_93, %c13, %c0_94] : memref<1x1x30x128xf32, #tpu.memory_space<vmem>>, vector<1x1x16x128xf32>
    %94 = vector.shape_cast %93 : vector<1x1x16x128xf32> to vector<16x128xf32>
    %95 = arith.truncf %94 : vector<16x128xf32> to vector<16x128xbf16>
    %c13_95 = arith.constant 13 : index
    %c0_96 = arith.constant 0 : index
    %c0_97 = arith.constant 0 : index
    %96 = vector.load %arg3[%c13_95, %c0_96, %c0_97] : memref<15x128x16xbf16, #tpu.memory_space<vmem>>, vector<1x128x16xbf16>
    %97 = vector.shape_cast %96 : vector<1x128x16xbf16> to vector<128x16xbf16>
    %cst_98 = arith.constant dense<0.000000e+00> : vector<16x16xf32>
    %98 = tpu.matmul %95, %97, %cst_98 {dimension_numbers = #tpu.dot_dimension_numbers<[1], [0], [0], [1], [0, 0, 1, 1], [], []>} : vector<16x128xbf16>, vector<128x16xbf16>, vector<16x16xf32> -> vector<16x16xf32>
    %99 = arith.addf %92, %98 : vector<16x16xf32>
    %c0_99 = arith.constant 0 : index
    %c0_100 = arith.constant 0 : index
    %c14 = arith.constant 14 : index
    %c0_101 = arith.constant 0 : index
    %100 = vector.load %arg2[%c0_99, %c0_100, %c14, %c0_101] : memref<1x1x30x128xf32, #tpu.memory_space<vmem>>, vector<1x1x16x128xf32>
    %101 = vector.shape_cast %100 : vector<1x1x16x128xf32> to vector<16x128xf32>
    %102 = arith.truncf %101 : vector<16x128xf32> to vector<16x128xbf16>
    %c14_102 = arith.constant 14 : index
    %c0_103 = arith.constant 0 : index
    %c0_104 = arith.constant 0 : index
    %103 = vector.load %arg3[%c14_102, %c0_103, %c0_104] : memref<15x128x16xbf16, #tpu.memory_space<vmem>>, vector<1x128x16xbf16>
    %104 = vector.shape_cast %103 : vector<1x128x16xbf16> to vector<128x16xbf16>
    %cst_105 = arith.constant dense<0.000000e+00> : vector<16x16xf32>
    %105 = tpu.matmul %102, %104, %cst_105 {dimension_numbers = #tpu.dot_dimension_numbers<[1], [0], [0], [1], [0, 0, 1, 1], [], []>} : vector<16x128xbf16>, vector<128x16xbf16>, vector<16x16xf32> -> vector<16x16xf32>
    %106 = arith.addf %99, %105 : vector<16x16xf32>
    %cst_106 = arith.constant 1.000000e+00 : f32
    %107 = vector.broadcast %cst_106 : f32 to vector<16x16xf32>
    %108 = arith.subf %107, %106 : vector<16x16xf32>
    %cst_107 = arith.constant 6.000000e-01 : f32
    %109 = vector.broadcast %cst_107 : f32 to vector<16x16xf32>
    %110 = arith.cmpf olt, %108, %109 : vector<16x16xf32>
    %cst_108 = arith.constant 0xFF800000 : f32
    %111 = vector.broadcast %cst_108 : f32 to vector<16x16xf32>
    %112 = arith.select %110, %108, %111 : vector<16x16xi1>, vector<16x16xf32>
    %113 = arith.maximumf %0, %112 : vector<16x16xf32>
    %c0_109 = arith.constant 0 : index
    %c0_110 = arith.constant 0 : index
    %c0_111 = arith.constant 0 : index
    %114 = vector.load %arg4[%c0_109, %c0_110, %c0_111] : memref<1x16x16xf32, #tpu.memory_space<vmem>>, vector<1x16x16xf32>
    %115 = vector.shape_cast %114 : vector<1x16x16xf32> to vector<16x16xf32>
    %116 = vector.shape_cast %108 : vector<16x16xf32> to vector<1x16x16xf32>
    tpu.vector_store %arg4[%c0_109, %c0_110, %c0_111], %116 {strides = array<i32>} : memref<1x16x16xf32, #tpu.memory_space<vmem>>, vector<1x16x16xf32>,
    %117 = vector.shape_cast %113 : vector<16x16xf32> to vector<1x16x16xf32>
    %cst_112 = arith.constant dense<0xFF800000> : vector<1xf32>
    %118 = vector.multi_reduction <maximumf>, %117, %cst_112 [1, 2] : vector<1x16x16xf32> to vector<1xf32>
    %119 = vector.shape_cast %118 : vector<1xf32> to vector<1x1x1xf32>
    %120 = vector.extract %119[0, 0, 0] : f32 from vector<1x1x1xf32>
    %121 = vector.broadcast %120 : f32 to vector<1x1x8x128xf32>
    %c0_113 = arith.constant 0 : index
    %c0_114 = arith.constant 0 : index
    %c0_115 = arith.constant 0 : index
    %c0_116 = arith.constant 0 : index
    %122 = vector.load %arg5[%c0_113, %c0_114, %c0_115, %c0_116] : memref<1x1x8x128xf32, #tpu.memory_space<vmem>>, vector<1x1x8x128xf32>
    tpu.vector_store %arg5[%c0_113, %c0_114, %c0_115, %c0_116], %121 {strides = array<i32>} : memref<1x1x8x128xf32, #tpu.memory_space<vmem>>, vector<1x1x8x128xf32>,
    return
  }
  func.func @transform_0(%arg0: i32, %arg1: i32) -> (i32, i32, i32, i32) {
    %c0_i32 = arith.constant 0 : i32
    %c0_i32_0 = arith.constant 0 : i32
    %c0_i32_1 = arith.constant 0 : i32
    return %arg0, %arg1, %c0_i32, %c0_i32_0 : i32, i32, i32, i32
  }
  func.func @transform_1(%arg0: i32, %arg1: i32) -> (i32, i32, i32) {
    %c0_i32 = arith.constant 0 : i32
    %c0_i32_0 = arith.constant 0 : i32
    %c0_i32_1 = arith.constant 0 : i32
    %c0_i32_2 = arith.constant 0 : i32
    return %c0_i32, %c0_i32_0, %c0_i32_1 : i32, i32, i32
  }
  func.func @transform_2(%arg0: i32, %arg1: i32) -> (i32, i32, i32) {
    %c0_i32 = arith.constant 0 : i32
    %c0_i32_0 = arith.constant 0 : i32
    return %arg0, %arg1, %c0_i32 : i32, i32, i32
  }
  func.func @transform_3(%arg0: i32, %arg1: i32) -> (i32, i32, i32, i32) {
    %c0_i32 = arith.constant 0 : i32
    %c0_i32_0 = arith.constant 0 : i32
    %c0_i32_1 = arith.constant 0 : i32
    return %arg0, %arg1, %c0_i32, %c0_i32_0 : i32, i32, i32, i32
  }
}

</mosaic_0001>

<bundles_post_ra>
// kernel: tpu_custom_call.1
= control target key start
LH: loop header
LB: loop body
LE: loop exit
PB: predicated region body
PF: predicated region fallthrough
CT: control target
= control target key end

     0   :  { %9 = vsyncpa [#allocation3], 0  ;;  %s3866_s0 = inlined_call_operand.vmem [shape: f32[2,1,30,128], index: 0, kind: input, shape index: {}]   ;;  %s3867_s1 = inlined_call_operand.vmem [shape: bf16[15,128,16], index: 1, kind: input, shape index: {}]   ;;  %s3868_s2 = inlined_call_operand.hbm [shape: f32[2,16,16], index: 2, kind: output, shape index: {0}]   ;;  %s3869_s3 = inlined_call_operand.hbm [shape: f32[2,1,8,128], index: 3, kind: output, shape index: {1}]  }
   0x1   :  { %11 = vsyncpa [#allocation3 + $0x1], 0 }
   0x2   :  { %12 = vsyncpa [#allocation5], 0 }
   0x3   :  { %14 = vsyncpa [#allocation5 + $0x1], 0  ;;  %s3162_s12 = smov 0   ;;  %s3164_s13 = smov 0  }
   0x4   :  { %s3166_s14 = smov 0   ;;  %s3168_s15 = smov 0  }
   0x5   :  { %s3170_s16 = smov 0   ;;  %s3172_s17 = smov 0  }
   0x6 LB: > { %s2045_s18 = sadd.s32 4294967295, %s3134_s17   ;;  %s2046_s19 = sadd.s32 4294967294, %s3134_s17   ;;  %s3134_s17 = sphi %s3172_s17, %s20_s17   ;;  %s3130_s16 = sphi %s3170_s16, %s3876_s16   ;;  %s3126_s15 = sphi %s3168_s15, %s3875_s15   ;;  %s3122_s14 = sphi %s3166_s14, %s3874_s14   ;;  %s3118_s13 = sphi %s3164_s13, %s3873_s13   ;;  %s3114_s12 = sphi %s3162_s12, %s3872_s12  }
   0x7   : > { %s32_s20 = sadd.s32 1, %s3130_s16  ;;  %s90_s21 = sadd.s32 1, %s3122_s14 }
   0x8   : > { %p34_p0 = scmp.ge.s32.totalorder %s32_s20, 2  ;;  %p100_p1 = scmp.ne.s32.totalorder %s3122_s14, %s3118_s13 }
   0x9   : > { %p101_p2 = scmp.eq.s32.totalorder %s2045_s18, 1  ;;  %p106_p3 = scmp.ne.s32.totalorder %s3118_s13, %s3114_s12 }
   0xa   : > { %s3878_s20 = smov (%p34_p0, %s32_s20), 0  ;;  %p107_p5 = scmp.eq.s32.totalorder %s2046_s19, 1 }
   0xb   : > { %p3202_p4 = por %p101_p2, %p100_p1  ;;  %s85_s23 = ssub.s32 %s3130_s16, %s3878_s20 }
   0xc   : > { %p2049_p6 = scmp.ge.s32.totalorder %s3134_s17, 1  ;;  %p88_p7 = scmp.eq.s32.totalorder %s85_s23, 0 }
   0xd   : > { %p3209_p8 = por %p107_p5, %p106_p3  ;;  %p168_p9 = scmp.lt.s32.totalorder %s3134_s17, 3 }
   0xe   : > { %s3215_s25 = scalar_select %p88_p7, %s3122_s14, %s90_s21  }
   0xf   : > { %p169_p10 = pnand %p2049_p6, %p168_p9 }
  0x10   : > { %p201_p11 = scmp.lt.s32.totalorder (!%p169_p10), %s3126_s15, 1  ;;  %s2406_s4 = sshll.u32 (!%p169_p10), %s3126_s15, 8 }
  0x11   : > { %172 = sbr.rel (%p169_p10) target bundleno = 699 (0x2bb), region = 28  ;;  %s3793_s7 = scalar_lea.hbm (!%p169_p10), %s3868_s2, %s2406_s4 }
  0x12   : > { %s3138_s18 = smov (!%p169_p10), [#allocation2]  }
  0x13   : > { %s3032_s19 = sshll.u32 (!%p169_p10), %s3138_s18, 4  ;;  %s3033_s19 = int_to_ptr.vmem [resolvable:$false] %s3032_s19 }
  0x14   : > { %s3034_s21 = scalar_lea.vmem (!%p169_p10), %s3033_s19, 512 }
  0x16   : > { %v2908_v0 = vld [vmem:[%s3867_s1 + $0x78] sm:$0xff]   ;;  %v3136_v1 = vmov 0.0   ;;  %v2910_v3 = vld [vmem:[%s3867_s1 + $0x70] sm:$0xff]   ;;  %vm3137_vm0 = vmmov 0   ;;  %v2912_v5 = vld [vmem:[%s3867_s1 + $0x68] sm:$0xff]   ;;  %s202_s27 = scalar_select %p201_p11, %s3126_s15, 1 }
  0x17   : > { %2542 = vmatprep.subr.bf16.mxu0 %v3136_v1  ;;  %2562 = vmatprep.subr.bf16.mxu1 %v3136_v1  ;;  %v2909_v2 = vld [vmem:[%s3867_s1 + $0x38] sm:$0xff]   ;;  %v2911_v4 = vld [vmem:[%s3867_s1 + $0x30] sm:$0xff]   ;;  %v2913_v6 = vld [vmem:[%s3867_s1 + $0x28] sm:$0xff]   ;;  %vm1878_vm1 = vcmask 130048  }
  0x18   : > { %2543 = vmatpush3.bf16.msra.mxu0 %v2908_v0  ;;  %2558 = vmatprep.mubr.msk.bf16.mxu0 %vm3137_vm0, %v3136_v1  ;;  %v2914_v7 = vld [vmem:[%s3867_s1 + $0x60] sm:$0xff]   ;;  %v2916_v9 = vld [vmem:[%s3867_s1 + $0x58] sm:$0xff]   ;;  %v2918_v11 = vld [vmem:[%s3867_s1 + $0x50] sm:$0xff]   ;;  %s2405_s5 = sshll.u32 %s202_s27, 5 }
  0x19   : > { %2563 = vmatpush3.bf16.msra.mxu1 %v2909_v2  ;;  %2544 = vmatprep.subr.bf16.mxu0 %v3136_v1  ;;  %v2915_v8 = vld [vmem:[%s3867_s1 + $0x20] sm:$0xff]   ;;  %v2917_v10 = vld [vmem:[%s3867_s1 + $0x18] sm:$0xff]   ;;  %v2919_v12 = vld [vmem:[%s3867_s1 + $0x10] sm:$0xff]   ;;  %s3274_s10 = scalar_lea.vmem %s3866_s0, %s2405_s5 }
  0x1a   : > { %2564 = vmatprep.subr.bf16.mxu1 %v3136_v1  ;;  %2578 = vmatprep.mubr.msk.bf16.mxu1 %vm3137_vm0, %v3136_v1  ;;  %v2920_v13 = vld [vmem:[%s3867_s1 + $0x48] sm:$0xff]   ;;  %v2922_v15 = vld [vmem:[%s3867_s1 + $0x40] sm:$0xff]   ;;  %v2924_v23 = vld [vmem:[%s3867_s1 + $0xb8] sm:$0xff]  }
  0x1b   : > { %v2921_v14 = vld [vmem:[%s3867_s1 + $0x8] sm:$0xff]   ;;  %v2923_v17 = vld [vmem:[%s3867_s1] sm:$0xff]   ;;  %v2925_v24 = vld [vmem:[%s3867_s1 + $0xf8] sm:$0xff]  }
  0x1c   : > { %2545 = vmatpush3.bf16.msra.mxu0 %v2910_v3  ;;  %v231_v16 = vld [vmem:[%s3274_s10 + $0x1] sm:$0xff]  ;;  %v3292_v18 = vld [vmem:[%s3274_s10 + $0x9] sm:$0xff]  ;;  %v2932_v31 = vld [vmem:[%s3867_s1 + $0x98] sm:$0xff]  }
  0x1d   : > { %2565 = vmatpush3.bf16.msra.mxu1 %v2911_v4  ;;  %2546 = vmatprep.subr.bf16.mxu0 %v3136_v1  ;;  %v212_v19 = vld [vmem:[%s3274_s10] sm:$0xff]  ;;  %v3297_v20 = vld [vmem:[%s3274_s10 + $0x8] sm:$0xff]  ;;  %v233_v21 = vpack.c.bf16 %v3292_v18, %v231_v16  ;;  %v2926_v25 = vld [vmem:[%s3867_s1 + $0xb0] sm:$0xff]  }
  0x1e   : > { %2566 = vmatprep.subr.bf16.mxu1 %v3136_v1  ;;  %v214_v22 = vpack.c.bf16 %v3297_v20, %v212_v19  ;;  %v2927_v26 = vld [vmem:[%s3867_s1 + $0xf0] sm:$0xff]   ;;  %v2928_v27 = vld [vmem:[%s3867_s1 + $0xa8] sm:$0xff]   ;;  %v2930_v29 = vld [vmem:[%s3867_s1 + $0xa0] sm:$0xff]  }
  0x1f   : > { %v2929_v28 = vld [vmem:[%s3867_s1 + $0xe8] sm:$0xff]   ;;  %v2931_v30 = vld [vmem:[%s3867_s1 + $0xe0] sm:$0xff]   ;;  %v2933_v32 = vld [vmem:[%s3867_s1 + $0xd8] sm:$0xff]  }
  0x20   : > { %2547 = vmatpush3.bf16.msra.mxu0 %v2912_v5  ;;  %v2934_v33 = vld [vmem:[%s3867_s1 + $0x90] sm:$0xff]   ;;  %v2936_v35 = vld [vmem:[%s3867_s1 + $0x88] sm:$0xff]   ;;  %v2938_v37 = vld [vmem:[%s3867_s1 + $0x80] sm:$0xff]  }
  0x21   : > { %2567 = vmatpush3.bf16.msra.mxu1 %v2913_v6  ;;  %2548 = vmatprep.subr.bf16.mxu0 %v3136_v1  ;;  %v2935_v34 = vld [vmem:[%s3867_s1 + $0xd0] sm:$0xff]   ;;  %v2937_v36 = vld [vmem:[%s3867_s1 + $0xc8] sm:$0xff]   ;;  %v2939_v39 = vld [vmem:[%s3867_s1 + $0xc0] sm:$0xff]  }
  0x22   : > { %2568 = vmatprep.subr.bf16.mxu1 %v3136_v1  ;;  %v429_v38 = vld [vmem:[%s3274_s10 + $0x2] sm:$0xff]  ;;  %v3370_v40 = vld [vmem:[%s3274_s10 + $0xa] sm:$0xff]  ;;  %v2940_v44 = vld [vmem:[%s3867_s1 + $0x138] sm:$0xff]  }
  0x23   : > { %v540_v41 = vld [vmem:[%s3274_s10 + $0x3] sm:$0xff]  ;;  %v3375_v42 = vld [vmem:[%s3274_s10 + $0xb] sm:$0xff]  ;;  %v431_v43 = vpack.c.bf16 %v3370_v40, %v429_v38  ;;  %v2941_v46 = vld [vmem:[%s3867_s1 + $0x178] sm:$0xff]  }
  0x24   : > { %2549 = vmatpush3.bf16.msra.mxu0 %v2914_v7  ;;  %v542_v45 = vpack.c.bf16 %v3375_v42, %v540_v41  ;;  %v2942_v47 = vld [vmem:[%s3867_s1 + $0x130] sm:$0xff]   ;;  %v2944_v49 = vld [vmem:[%s3867_s1 + $0x128] sm:$0xff]   ;;  %v2946_v51 = vld [vmem:[%s3867_s1 + $0x120] sm:$0xff]  }
  0x25   : > { %2569 = vmatpush3.bf16.msra.mxu1 %v2915_v8  ;;  %2550 = vmatprep.subr.bf16.mxu0 %v3136_v1  ;;  %v2943_v48 = vld [vmem:[%s3867_s1 + $0x170] sm:$0xff]   ;;  %v2945_v50 = vld [vmem:[%s3867_s1 + $0x168] sm:$0xff]   ;;  %v2947_v52 = vld [vmem:[%s3867_s1 + $0x160] sm:$0xff]  }
  0x26   : > { %2570 = vmatprep.subr.bf16.mxu1 %v3136_v1  ;;  %v2948_v53 = vld [vmem:[%s3867_s1 + $0x118] sm:$0xff]   ;;  %v2950_v55 = vld [vmem:[%s3867_s1 + $0x110] sm:$0xff]   ;;  %v2952_v57 = vld [vmem:[%s3867_s1 + $0x108] sm:$0xff]  }
  0x27   : > { %v2949_v54 = vld [vmem:[%s3867_s1 + $0x158] sm:$0xff]   ;;  %v2951_v56 = vld [vmem:[%s3867_s1 + $0x150] sm:$0xff]   ;;  %v2953_v58 = vld [vmem:[%s3867_s1 + $0x148] sm:$0xff]  }
  0x28   : > { %2551 = vmatpush3.bf16.msra.mxu0 %v2916_v9  ;;  %v2954_v59 = vld [vmem:[%s3867_s1 + $0x100] sm:$0xff]   ;;  %v3448_v62 = vld [vmem:[%s3274_s10 + $0xc] sm:$0xff]  ;;  %v2956_v3 = vld [vmem:[%s3867_s1 + $0x1b8] sm:$0xff]  }
  0x29   : > { %2571 = vmatpush3.bf16.msra.mxu1 %v2917_v10  ;;  %2552 = vmatprep.subr.bf16.mxu0 %v3136_v1  ;;  %v651_v60 = vld [vmem:[%s3274_s10 + $0x4] sm:$0xff]  ;;  %v3453_v0 = vld [vmem:[%s3274_s10 + $0xd] sm:$0xff]  ;;  %v2957_v5 = vld [vmem:[%s3867_s1 + $0x1f8] sm:$0xff]  }
  0x2a   : > { %2572 = vmatprep.subr.bf16.mxu1 %v3136_v1  ;;  %v2955_v61 = vld [vmem:[%s3867_s1 + $0x140] sm:$0xff]   ;;  %v653_v2 = vpack.c.bf16 %v3448_v62, %v651_v60  ;;  %v2958_v6 = vld [vmem:[%s3867_s1 + $0x1b0] sm:$0xff]   ;;  %v2960_v8 = vld [vmem:[%s3867_s1 + $0x1a8] sm:$0xff]  }
  0x2b   : > { %v762_v63 = vld [vmem:[%s3274_s10 + $0x5] sm:$0xff]  ;;  %v2959_v7 = vld [vmem:[%s3867_s1 + $0x1f0] sm:$0xff]  }
  0x2c   : > { %2553 = vmatpush3.bf16.msra.mxu0 %v2918_v11  ;;  %v764_v4 = vpack.c.bf16 %v3453_v0, %v762_v63  ;;  %v2961_v9 = vld [vmem:[%s3867_s1 + $0x1e8] sm:$0xff]   ;;  %v2962_v10 = vld [vmem:[%s3867_s1 + $0x1a0] sm:$0xff]   ;;  %v2982_v38 = vld [vmem:[%s3867_s1 + $0x210] sm:$0xff]  }
  0x2d   : > { %2573 = vmatpush3.bf16.msra.mxu1 %v2919_v12  ;;  %2554 = vmatprep.subr.bf16.mxu0 %v3136_v1  ;;  %v2963_v11 = vld [vmem:[%s3867_s1 + $0x1e0] sm:$0xff]   ;;  %v2964_v12 = vld [vmem:[%s3867_s1 + $0x198] sm:$0xff]   ;;  %v2968_v16 = vld [vmem:[%s3867_s1 + $0x188] sm:$0xff]  }
  0x2e   : > { %2574 = vmatprep.subr.bf16.mxu1 %v3136_v1  ;;  %v2970_v19 = vld [vmem:[%s3867_s1 + $0x180] sm:$0xff]   ;;  %v2984_v41 = vld [vmem:[%s3867_s1 + $0x208] sm:$0xff]  }
  0x2f   : > { %v3000_v60 = vld [vmem:[%s3867_s1 + $0x288] sm:$0xff]   ;;  %v3002_v63 = vld [vmem:[%s3867_s1 + $0x280] sm:$0xff]  }
  0x30   : > { %2555 = vmatpush3.bf16.msra.mxu0 %v2920_v13  ;;  %v2965_v13 = vld [vmem:[%s3867_s1 + $0x1d8] sm:$0xff]  }
  0x31   : > { %2575 = vmatpush3.bf16.msra.mxu1 %v2921_v14  ;;  %2556 = vmatprep.subr.bf16.mxu0 %v3136_v1  ;;  %v2966_v14 = vld [vmem:[%s3867_s1 + $0x190] sm:$0xff]  }
  0x32   : > { %2576 = vmatprep.subr.bf16.mxu1 %v3136_v1 }
  0x34   : > { %2557 = vmatpush3.bf16.msra.mxu0 %v2922_v15  ;;  %v2967_v15 = vld [vmem:[%s3867_s1 + $0x1d0] sm:$0xff]  }
  0x35   : > { %2577 = vmatpush3.bf16.msra.mxu1 %v2923_v17  ;;  %2582 = vmatprep.subr.bf16.mxu0 %v3136_v1  ;;  %v2969_v17 = vld [vmem:[%s3867_s1 + $0x1c8] sm:$0xff]  }
  0x36   : > { %2602 = vmatprep.subr.bf16.mxu1 %v3136_v1 }
  0x37   : > { %2559 = vmatmul.mubr.bf16.vlgmr.msra.gmra.mxu0 %v233_v21  ;;  %v873_v21 = vld [vmem:[%s3274_s10 + $0x6] sm:$0xff] }
  0x38   : > { %2579 = vmatmul.mubr.bf16.vlgmr.msra.gmra.mxu1 %v214_v22  ;;  %2583 = vmatpush3.bf16.msra.mxu0 %v2924_v23  ;;  %v2971_v22 = vld [vmem:[%s3867_s1 + $0x1c0] sm:$0xff]   ;;  %v3526_v23 = vld [vmem:[%s3274_s10 + $0xe] sm:$0xff] }
  0x39   : > { %2603 = vmatpush3.bf16.msra.mxu1 %v2925_v24  ;;  %2584 = vmatprep.subr.bf16.mxu0 %v3136_v1  ;;  %v984_v24 = vld [vmem:[%s3274_s10 + $0x7] sm:$0xff] }
  0x3a   : > { %2604 = vmatprep.subr.bf16.mxu1 %v3136_v1  ;;  %2598 = vmatprep.mubr.msk.bf16.mxu0 %vm3137_vm0, %v3136_v1 }
  0x3b   : > { %2618 = vmatprep.mubr.msk.bf16.mxu1 %vm3137_vm0, %v3136_v1 }
  0x3c   : > { %2585 = vmatpush3.bf16.msra.mxu0 %v2926_v25  ;;  %v985_v25 = vld [vmem:[%s3274_s10 + $0xf] sm:$0xff] }
  0x3d   : > { %2605 = vmatpush3.bf16.msra.mxu1 %v2927_v26  ;;  %2586 = vmatprep.subr.bf16.mxu0 %v3136_v1  ;;  %v875_v26 = vpack.c.bf16 %v3526_v23, %v873_v21  ;;  %v3018_v21 = vld [vmem:[%s3867_s1 + $0x300] sm:$0xff]  }
  0x3e   : > { %2606 = vmatprep.subr.bf16.mxu1 %v3136_v1 }
  0x40   : > { %2587 = vmatpush3.bf16.msra.mxu0 %v2928_v27  ;;  %v2972_v27 = vld [vmem:[%s3867_s1 + $0x238] sm:$0xff]  }
  0x41   : > { %2607 = vmatpush3.bf16.msra.mxu1 %v2929_v28  ;;  %2588 = vmatprep.subr.bf16.mxu0 %v3136_v1  ;;  %v986_v28 = vpack.c.bf16 %v985_v25, %v984_v24  ;;  %v3019_v24 = vld [vmem:[%s3867_s1 + $0x340] sm:$0xff]   ;;  %v1651_v25 = vld [vmem:[%s3274_s10 + $0x15] sm:$0xff] }
  0x42   : > { %2608 = vmatprep.subr.bf16.mxu1 %v3136_v1 }
  0x44   : > { %2589 = vmatpush3.bf16.msra.mxu0 %v2930_v29  ;;  %v2973_v29 = vld [vmem:[%s3867_s1 + $0x278] sm:$0xff]  }
  0x45   : > { %2609 = vmatpush3.bf16.msra.mxu1 %v2931_v30  ;;  %2590 = vmatprep.subr.bf16.mxu0 %v3136_v1  ;;  %v2974_v30 = vld [vmem:[%s3867_s1 + $0x230] sm:$0xff]  }
  0x46   : > { %2610 = vmatprep.subr.bf16.mxu1 %v3136_v1 }
  0x48   : > { %2591 = vmatpush3.bf16.msra.mxu0 %v2932_v31  ;;  %v2975_v31 = vld [vmem:[%s3867_s1 + $0x270] sm:$0xff]  }
  0x49   : > { %2611 = vmatpush3.bf16.msra.mxu1 %v2933_v32  ;;  %2592 = vmatprep.subr.bf16.mxu0 %v3136_v1  ;;  %v2976_v32 = vld [vmem:[%s3867_s1 + $0x228] sm:$0xff]  }
  0x4a   : > { %2612 = vmatprep.subr.bf16.mxu1 %v3136_v1 }
  0x4c   : > { %2593 = vmatpush3.bf16.msra.mxu0 %v2934_v33  ;;  %v2977_v33 = vld [vmem:[%s3867_s1 + $0x268] sm:$0xff]  }
  0x4d   : > { %2613 = vmatpush3.bf16.msra.mxu1 %v2935_v34  ;;  %2594 = vmatprep.subr.bf16.mxu0 %v3136_v1  ;;  %v2978_v34 = vld [vmem:[%s3867_s1 + $0x220] sm:$0xff]  }
  0x4e   : > { %2614 = vmatprep.subr.bf16.mxu1 %v3136_v1 }
  0x50   : > { %2595 = vmatpush3.bf16.msra.mxu0 %v2936_v35  ;;  %v2979_v35 = vld [vmem:[%s3867_s1 + $0x260] sm:$0xff]  }
  0x51   : > { %2615 = vmatpush3.bf16.msra.mxu1 %v2937_v36  ;;  %2596 = vmatprep.subr.bf16.mxu0 %v3136_v1  ;;  %v2980_v36 = vld [vmem:[%s3867_s1 + $0x218] sm:$0xff]  }
  0x52   : > { %2616 = vmatprep.subr.bf16.mxu1 %v3136_v1 }
  0x54   : > { %2597 = vmatpush3.bf16.msra.mxu0 %v2938_v37  ;;  %v2981_v37 = vld [vmem:[%s3867_s1 + $0x258] sm:$0xff]  }
  0x55   : > { %2617 = vmatpush3.bf16.msra.mxu1 %v2939_v39  ;;  %2622 = vmatprep.subr.bf16.mxu0 %v3136_v1  ;;  %v2983_v39 = vld [vmem:[%s3867_s1 + $0x250] sm:$0xff]  }
  0x56   : > { %2642 = vmatprep.subr.bf16.mxu1 %v3136_v1 }
  0x57   : > { %2599 = vmatmul.mubr.bf16.vlgmr.msra.gmra.mxu0 %v431_v43  ;;  %v2985_v43 = vld [vmem:[%s3867_s1 + $0x248] sm:$0xff]  }
  0x58   : > { %2623 = vmatpush3.bf16.msra.mxu0 %v2940_v44  ;;  %2619 = vmatmul.mubr.bf16.vlgmr.msra.gmra.mxu1 %v542_v45  ;;  %v2986_v44 = vld [vmem:[%s3867_s1 + $0x200] sm:$0xff]   ;;  %v1096_v45 = vld [vmem:[%s3274_s10 + $0x10] sm:$0xff] }
  0x59   : > { %2643 = vmatpush3.bf16.msra.mxu1 %v2941_v46  ;;  %2624 = vmatprep.subr.bf16.mxu0 %v3136_v1  ;;  %v2987_v46 = vld [vmem:[%s3867_s1 + $0x240] sm:$0xff]  }
  0x5a   : > { %2644 = vmatprep.subr.bf16.mxu1 %v3136_v1  ;;  %2638 = vmatprep.mubr.msk.bf16.mxu0 %vm3137_vm0, %v3136_v1 }
  0x5b   : > { %2658 = vmatprep.mubr.msk.bf16.mxu1 %vm3137_vm0, %v3136_v1 }
  0x5c   : > { %2625 = vmatpush3.bf16.msra.mxu0 %v2942_v47  ;;  %v1207_v47 = vld [vmem:[%s3274_s10 + $0x11] sm:$0xff] }
  0x5d   : > { %2645 = vmatpush3.bf16.msra.mxu1 %v2943_v48  ;;  %2626 = vmatprep.subr.bf16.mxu0 %v3136_v1  ;;  %v1097_v48 = vpack.c.bf16 %v1096_v45, %v3297_v20  ;;  %v2990_v20 = vld [vmem:[%s3867_s1 + $0x2b0] sm:$0xff]   ;;  %v3027_v45 = vld [vmem:[%s3867_s1 + $0x380] sm:$0xff]  }
  0x5e   : > { %2646 = vmatprep.subr.bf16.mxu1 %v3136_v1 }
  0x60   : > { %2627 = vmatpush3.bf16.msra.mxu0 %v2944_v49  ;;  %v2988_v49 = vld [vmem:[%s3867_s1 + $0x2b8] sm:$0xff]  }
  0x61   : > { %2647 = vmatpush3.bf16.msra.mxu1 %v2945_v50  ;;  %2628 = vmatprep.subr.bf16.mxu0 %v3136_v1  ;;  %v1208_v50 = vpack.c.bf16 %v1207_v47, %v3292_v18  ;;  %v2991_v18 = vld [vmem:[%s3867_s1 + $0x2f0] sm:$0xff]  }
  0x62   : > { %2648 = vmatprep.subr.bf16.mxu1 %v3136_v1 }
  0x64   : > { %2629 = vmatpush3.bf16.msra.mxu0 %v2946_v51  ;;  %v2989_v51 = vld [vmem:[%s3867_s1 + $0x2f8] sm:$0xff]  }
  0x65   : > { %2649 = vmatpush3.bf16.msra.mxu1 %v2947_v52  ;;  %2630 = vmatprep.subr.bf16.mxu0 %v3136_v1  ;;  %v2992_v52 = vld [vmem:[%s3867_s1 + $0x2a8] sm:$0xff]  }
  0x66   : > { %2650 = vmatprep.subr.bf16.mxu1 %v3136_v1 }
  0x68   : > { %2631 = vmatpush3.bf16.msra.mxu0 %v2948_v53  ;;  %v2993_v53 = vld [vmem:[%s3867_s1 + $0x2e8] sm:$0xff]  }
  0x69   : > { %2651 = vmatpush3.bf16.msra.mxu1 %v2949_v54  ;;  %2632 = vmatprep.subr.bf16.mxu0 %v3136_v1  ;;  %v2994_v54 = vld [vmem:[%s3867_s1 + $0x2a0] sm:$0xff]  }
  0x6a   : > { %2652 = vmatprep.subr.bf16.mxu1 %v3136_v1 }
  0x6c   : > { %2633 = vmatpush3.bf16.msra.mxu0 %v2950_v55  ;;  %v2995_v55 = vld [vmem:[%s3867_s1 + $0x2e0] sm:$0xff]  }
  0x6d   : > { %2653 = vmatpush3.bf16.msra.mxu1 %v2951_v56  ;;  %2634 = vmatprep.subr.bf16.mxu0 %v3136_v1  ;;  %v2996_v56 = vld [vmem:[%s3867_s1 + $0x298] sm:$0xff]  }
  0x6e   : > { %2654 = vmatprep.subr.bf16.mxu1 %v3136_v1 }
  0x70   : > { %2635 = vmatpush3.bf16.msra.mxu0 %v2952_v57  ;;  %v2997_v57 = vld [vmem:[%s3867_s1 + $0x2d8] sm:$0xff]  }
  0x71   : > { %2655 = vmatpush3.bf16.msra.mxu1 %v2953_v58  ;;  %2636 = vmatprep.subr.bf16.mxu0 %v3136_v1  ;;  %v2998_v58 = vld [vmem:[%s3867_s1 + $0x290] sm:$0xff]  }
  0x72   : > { %2656 = vmatprep.subr.bf16.mxu1 %v3136_v1 }
  0x74   : > { %2637 = vmatpush3.bf16.msra.mxu0 %v2954_v59  ;;  %v2999_v59 = vld [vmem:[%s3867_s1 + $0x2d0] sm:$0xff]  }
  0x75   : > { %2657 = vmatpush3.bf16.msra.mxu1 %v2955_v61  ;;  %2662 = vmatprep.subr.bf16.mxu0 %v3136_v1  ;;  %v3001_v61 = vld [vmem:[%s3867_s1 + $0x2c8] sm:$0xff]  }
  0x76   : > { %2682 = vmatprep.subr.bf16.mxu1 %v3136_v1 }
  0x77   : > { %2639 = vmatmul.mubr.bf16.vlgmr.msra.gmra.mxu0 %v653_v2  ;;  %v1318_v2 = vld [vmem:[%s3274_s10 + $0x12] sm:$0xff] }
  0x78   : > { %2663 = vmatpush3.bf16.msra.mxu0 %v2956_v3  ;;  %2659 = vmatmul.mubr.bf16.vlgmr.msra.gmra.mxu1 %v764_v4  ;;  %v3003_v3 = vld [vmem:[%s3867_s1 + $0x2c0] sm:$0xff]   ;;  %v1429_v4 = vld [vmem:[%s3274_s10 + $0x13] sm:$0xff] }
  0x79   : > { %2683 = vmatpush3.bf16.msra.mxu1 %v2957_v5  ;;  %2664 = vmatprep.subr.bf16.mxu0 %v3136_v1  ;;  %v1319_v5 = vpack.c.bf16 %v1318_v2, %v3370_v40  ;;  %v3006_v40 = vld [vmem:[%s3867_s1 + $0x330] sm:$0xff]  }
  0x7a   : > { %2684 = vmatprep.subr.bf16.mxu1 %v3136_v1  ;;  %2678 = vmatprep.mubr.msk.bf16.mxu0 %vm3137_vm0, %v3136_v1 }
  0x7b   : > { %2698 = vmatprep.mubr.msk.bf16.mxu1 %vm3137_vm0, %v3136_v1 }
  0x7c   : > { %2665 = vmatpush3.bf16.msra.mxu0 %v2958_v6  ;;  %v3004_v6 = vld [vmem:[%s3867_s1 + $0x338] sm:$0xff]  }
  0x7d   : > { %2685 = vmatpush3.bf16.msra.mxu1 %v2959_v7  ;;  %2666 = vmatprep.subr.bf16.mxu0 %v3136_v1  ;;  %v1430_v7 = vpack.c.bf16 %v1429_v4, %v3375_v42  ;;  %v3007_v42 = vld [vmem:[%s3867_s1 + $0x370] sm:$0xff]  }
  0x7e   : > { %2686 = vmatprep.subr.bf16.mxu1 %v3136_v1 }
  0x80   : > { %2667 = vmatpush3.bf16.msra.mxu0 %v2960_v8  ;;  %v3005_v8 = vld [vmem:[%s3867_s1 + $0x378] sm:$0xff]  }
  0x81   : > { %2687 = vmatpush3.bf16.msra.mxu1 %v2961_v9  ;;  %2668 = vmatprep.subr.bf16.mxu0 %v3136_v1  ;;  %v3008_v9 = vld [vmem:[%s3867_s1 + $0x328] sm:$0xff]  }
  0x82   : > { %2688 = vmatprep.subr.bf16.mxu1 %v3136_v1 }
  0x84   : > { %2669 = vmatpush3.bf16.msra.mxu0 %v2962_v10  ;;  %v3009_v10 = vld [vmem:[%s3867_s1 + $0x368] sm:$0xff]  }
  0x85   : > { %2689 = vmatpush3.bf16.msra.mxu1 %v2963_v11  ;;  %2670 = vmatprep.subr.bf16.mxu0 %v3136_v1  ;;  %v3010_v11 = vld [vmem:[%s3867_s1 + $0x320] sm:$0xff]  }
  0x86   : > { %2690 = vmatprep.subr.bf16.mxu1 %v3136_v1 }
  0x88   : > { %2671 = vmatpush3.bf16.msra.mxu0 %v2964_v12  ;;  %v3011_v12 = vld [vmem:[%s3867_s1 + $0x360] sm:$0xff]  }
  0x89   : > { %2691 = vmatpush3.bf16.msra.mxu1 %v2965_v13  ;;  %2672 = vmatprep.subr.bf16.mxu0 %v3136_v1  ;;  %v3012_v13 = vld [vmem:[%s3867_s1 + $0x318] sm:$0xff]  }
  0x8a   : > { %2692 = vmatprep.subr.bf16.mxu1 %v3136_v1 }
  0x8c   : > { %2673 = vmatpush3.bf16.msra.mxu0 %v2966_v14  ;;  %v3013_v14 = vld [vmem:[%s3867_s1 + $0x358] sm:$0xff]  }
  0x8d   : > { %2693 = vmatpush3.bf16.msra.mxu1 %v2967_v15  ;;  %2674 = vmatprep.subr.bf16.mxu0 %v3136_v1  ;;  %v3014_v15 = vld [vmem:[%s3867_s1 + $0x310] sm:$0xff]  }
  0x8e   : > { %2694 = vmatprep.subr.bf16.mxu1 %v3136_v1 }
  0x90   : > { %2675 = vmatpush3.bf16.msra.mxu0 %v2968_v16  ;;  %v3015_v16 = vld [vmem:[%s3867_s1 + $0x350] sm:$0xff]  }
  0x91   : > { %2695 = vmatpush3.bf16.msra.mxu1 %v2969_v17  ;;  %2676 = vmatprep.subr.bf16.mxu0 %v3136_v1  ;;  %v3016_v17 = vld [vmem:[%s3867_s1 + $0x308] sm:$0xff]  }
  0x92   : > { %2696 = vmatprep.subr.bf16.mxu1 %v3136_v1 }
  0x94   : > { %2677 = vmatpush3.bf16.msra.mxu0 %v2970_v19  ;;  %v3017_v19 = vld [vmem:[%s3867_s1 + $0x348] sm:$0xff]  }
  0x95   : > { %2697 = vmatpush3.bf16.msra.mxu1 %v2971_v22  ;;  %2702 = vmatprep.subr.bf16.mxu0 %v3136_v1  ;;  %v1540_v22 = vld [vmem:[%s3274_s10 + $0x14] sm:$0xff] }
  0x96   : > { %2722 = vmatprep.subr.bf16.mxu1 %v3136_v1 }
  0x97   : > { %2679 = vmatmul.mubr.bf16.vlgmr.msra.gmra.mxu0 %v875_v26  ;;  %v1541_v26 = vpack.c.bf16 %v1540_v22, %v3448_v62 }
  0x98   : > { %2703 = vmatpush3.bf16.msra.mxu0 %v2972_v27  ;;  %2699 = vmatmul.mubr.bf16.vlgmr.msra.gmra.mxu1 %v986_v28  ;;  %v3020_v27 = vld [vmem:[%s3867_s1 + $0x3b8] sm:$0xff]   ;;  %v1652_v28 = vpack.c.bf16 %v1651_v25, %v3453_v0 }
  0x99   : > { %2723 = vmatpush3.bf16.msra.mxu1 %v2973_v29  ;;  %2704 = vmatprep.subr.bf16.mxu0 %v3136_v1 }
  0x9a   : > { %2724 = vmatprep.subr.bf16.mxu1 %v3136_v1  ;;  %2718 = vmatprep.mubr.msk.bf16.mxu0 %vm3137_vm0, %v3136_v1 }
  0x9b   : > { %2738 = vmatprep.mubr.msk.bf16.mxu1 %vm3137_vm0, %v3136_v1 }
  0x9c   : > { %2705 = vmatpush3.bf16.msra.mxu0 %v2974_v30 }
  0x9d   : > { %2725 = vmatpush3.bf16.msra.mxu1 %v2975_v31  ;;  %2706 = vmatprep.subr.bf16.mxu0 %v3136_v1  ;;  %v3021_v31 = vld [vmem:[%s3867_s1 + $0x3b0] sm:$0xff]  }
  0x9e   : > { %2726 = vmatprep.subr.bf16.mxu1 %v3136_v1 }
  0xa0   : > { %2707 = vmatpush3.bf16.msra.mxu0 %v2976_v32 }
  0xa1   : > { %2727 = vmatpush3.bf16.msra.mxu1 %v2977_v33  ;;  %2708 = vmatprep.subr.bf16.mxu0 %v3136_v1 }
  0xa2   : > { %2728 = vmatprep.subr.bf16.mxu1 %v3136_v1 }
  0xa4   : > { %2709 = vmatpush3.bf16.msra.mxu0 %v2978_v34 }
  0xa5   : > { %2729 = vmatpush3.bf16.msra.mxu1 %v2979_v35  ;;  %2710 = vmatprep.subr.bf16.mxu0 %v3136_v1  ;;  %v3022_v35 = vld [vmem:[%s3867_s1 + $0x3a8] sm:$0xff]  }
  0xa6   : > { %2730 = vmatprep.subr.bf16.mxu1 %v3136_v1 }
  0xa8   : > { %2711 = vmatpush3.bf16.msra.mxu0 %v2980_v36 }
  0xa9   : > { %2731 = vmatpush3.bf16.msra.mxu1 %v2981_v37  ;;  %2712 = vmatprep.subr.bf16.mxu0 %v3136_v1 }
  0xaa   : > { %2732 = vmatprep.subr.bf16.mxu1 %v3136_v1 }
  0xac   : > { %2713 = vmatpush3.bf16.msra.mxu0 %v2982_v38 }
  0xad   : > { %2733 = vmatpush3.bf16.msra.mxu1 %v2983_v39  ;;  %2714 = vmatprep.subr.bf16.mxu0 %v3136_v1  ;;  %v3023_v39 = vld [vmem:[%s3867_s1 + $0x3a0] sm:$0xff]  }
  0xae   : > { %2734 = vmatprep.subr.bf16.mxu1 %v3136_v1 }
  0xb0   : > { %2715 = vmatpush3.bf16.msra.mxu0 %v2984_v41  ;;  %v3024_v41 = vld [vmem:[%s3867_s1 + $0x398] sm:$0xff]  }
  0xb1   : > { %2735 = vmatpush3.bf16.msra.mxu1 %v2985_v43  ;;  %2716 = vmatprep.subr.bf16.mxu0 %v3136_v1  ;;  %v3025_v43 = vld [vmem:[%s3867_s1 + $0x390] sm:$0xff]  }
  0xb2   : > { %2736 = vmatprep.subr.bf16.mxu1 %v3136_v1 }
  0xb4   : > { %2717 = vmatpush3.bf16.msra.mxu0 %v2986_v44  ;;  %v3026_v44 = vld [vmem:[%s3867_s1 + $0x388] sm:$0xff]  }
  0xb5   : > { %2737 = vmatpush3.bf16.msra.mxu1 %v2987_v46  ;;  %2742 = vmatprep.subr.bf16.mxu0 %v3136_v1  ;;  %v1762_v46 = vld [vmem:[%s3274_s10 + $0x16] sm:$0xff]  ;;  %s3786_s10 = sand.u32 1, %s3118_s13  }
  0xb6   : > { %2762 = vmatprep.subr.bf16.mxu1 %v3136_v1  ;;  %v1763_v47 = vpack.c.bf16 %v1762_v46, %v3526_v23  ;;  %s2050_s29 = sshll.u32 %s3786_s10, 4  ;;  %s1896_s9 = scalar_lea.sflag [#allocation3], %s3786_s10 }
  0xb7   : > { %2719 = vmatmul.mubr.bf16.vlgmr.msra.gmra.mxu0 %v1097_v48  ;;  %s193_s30 = scalar_lea.vmem [#allocation2], %s2050_s29 }
  0xb8   : > { %2743 = vmatpush3.bf16.msra.mxu0 %v2988_v49  ;;  %2739 = vmatmul.mubr.bf16.vlgmr.msra.gmra.mxu1 %v1208_v50  ;;  %s1916_s8 = sshll.u32 %s193_s30, 4  ;;  %s3795_s8 = int_to_ptr.vmem [resolvable:$true] %s1916_s8 }
  0xb9   : > { %2763 = vmatpush3.bf16.msra.mxu1 %v2989_v51  ;;  %2744 = vmatprep.subr.bf16.mxu0 %v3136_v1  ;;  %s3028_s11 = scalar_lea.vmem %s3795_s8, 256  ;;  %p3035_p1 = scmp.lt.s32.totalorder %s3795_s8, %s3033_s19 }
  0xba   : > { %2764 = vmatprep.subr.bf16.mxu1 %v3136_v1  ;;  %2758 = vmatprep.mubr.msk.bf16.mxu0 %vm3137_vm0, %v3136_v1  ;;  %p3029_p12 = scmp.ne.s32.totalorder %s3795_s8, %s3028_s11  ;;  %p3036_p2 = scmp.lt.s32.totalorder %s3034_s21, %s3028_s11 }
  0xbb   : > { %2778 = vmatprep.mubr.msk.bf16.mxu1 %vm3137_vm0, %v3136_v1 }
  0xbc   : > { %2745 = vmatpush3.bf16.msra.mxu0 %v2990_v20  ;;  %p3030_p13 = pnand %p3029_p12, %p3202_p4  ;;  %p3037_p3 = por %p3036_p2, %p3035_p1 }
  0xbd   : > { %2765 = vmatpush3.bf16.msra.mxu1 %v2991_v18  ;;  %2746 = vmatprep.subr.bf16.mxu0 %v3136_v1 }
  0xbe   : > { %2766 = vmatprep.subr.bf16.mxu1 %v3136_v1  ;;  %p3031_p0 = pneg %p3030_p13 }
  0xc0   : > { %2747 = vmatpush3.bf16.msra.mxu0 %v2992_v52  ;;  %p3038_p5 = pnand %p3037_p3, %p3031_p0 }
  0xc1   : > { %2767 = vmatpush3.bf16.msra.mxu1 %v2993_v53  ;;  %2748 = vmatprep.subr.bf16.mxu0 %v3136_v1 }
  0xc2   : > { %2768 = vmatprep.subr.bf16.mxu1 %v3136_v1 }
  0xc4   : > { %2749 = vmatpush3.bf16.msra.mxu0 %v2994_v54 }
  0xc5   : > { %2769 = vmatpush3.bf16.msra.mxu1 %v2995_v55  ;;  %2750 = vmatprep.subr.bf16.mxu0 %v3136_v1 }
  0xc6   : > { %2770 = vmatprep.subr.bf16.mxu1 %v3136_v1 }
  0xc8   : > { %2751 = vmatpush3.bf16.msra.mxu0 %v2996_v56 }
  0xc9   : > { %2771 = vmatpush3.bf16.msra.mxu1 %v2997_v57  ;;  %2752 = vmatprep.subr.bf16.mxu0 %v3136_v1 }
  0xca   : > { %2772 = vmatprep.subr.bf16.mxu1 %v3136_v1 }
  0xcc   : > { %2753 = vmatpush3.bf16.msra.mxu0 %v2998_v58 }
  0xcd   : > { %2773 = vmatpush3.bf16.msra.mxu1 %v2999_v59  ;;  %2754 = vmatprep.subr.bf16.mxu0 %v3136_v1 }
  0xce   : > { %2774 = vmatprep.subr.bf16.mxu1 %v3136_v1 }
  0xd0   : > { %2755 = vmatpush3.bf16.msra.mxu0 %v3000_v60 }
  0xd1   : > { %2775 = vmatpush3.bf16.msra.mxu1 %v3001_v61  ;;  %2756 = vmatprep.subr.bf16.mxu0 %v3136_v1 }
  0xd2   : > { %2776 = vmatprep.subr.bf16.mxu1 %v3136_v1 }
  0xd4   : > { %2757 = vmatpush3.bf16.msra.mxu0 %v3002_v63 }
  0xd5   : > { %2777 = vmatpush3.bf16.msra.mxu1 %v3003_v3  ;;  %2782 = vmatprep.subr.bf16.mxu0 %v3136_v1 }
  0xd6   : > { %2802 = vmatprep.subr.bf16.mxu1 %v3136_v1 }
  0xd7   : > { %2759 = vmatmul.mubr.bf16.vlgmr.msra.gmra.mxu0 %v1319_v5 }
  0xd8   : > { %2783 = vmatpush3.bf16.msra.mxu0 %v3004_v6  ;;  %2779 = vmatmul.mubr.bf16.vlgmr.msra.gmra.mxu1 %v1430_v7 }
  0xd9   : > { %2803 = vmatpush3.bf16.msra.mxu1 %v3005_v8  ;;  %2784 = vmatprep.subr.bf16.mxu0 %v3136_v1 }
  0xda   : > { %2804 = vmatprep.subr.bf16.mxu1 %v3136_v1  ;;  %2798 = vmatprep.mubr.msk.bf16.mxu0 %vm3137_vm0, %v3136_v1 }
  0xdb   : > { %2818 = vmatprep.mubr.msk.bf16.mxu1 %vm3137_vm0, %v3136_v1 }
  0xdc   : > { %2785 = vmatpush3.bf16.msra.mxu0 %v3006_v40 }
  0xdd   : > { %2805 = vmatpush3.bf16.msra.mxu1 %v3007_v42  ;;  %2786 = vmatprep.subr.bf16.mxu0 %v3136_v1 }
  0xde   : > { %2806 = vmatprep.subr.bf16.mxu1 %v3136_v1 }
  0xe0   : > { %2787 = vmatpush3.bf16.msra.mxu0 %v3008_v9 }
  0xe1   : > { %2807 = vmatpush3.bf16.msra.mxu1 %v3009_v10  ;;  %2788 = vmatprep.subr.bf16.mxu0 %v3136_v1 }
  0xe2   : > { %2808 = vmatprep.subr.bf16.mxu1 %v3136_v1 }
  0xe4   : > { %2789 = vmatpush3.bf16.msra.mxu0 %v3010_v11 }
  0xe5   : > { %2809 = vmatpush3.bf16.msra.mxu1 %v3011_v12  ;;  %2790 = vmatprep.subr.bf16.mxu0 %v3136_v1 }
  0xe6   : > { %2810 = vmatprep.subr.bf16.mxu1 %v3136_v1 }
  0xe8   : > { %2791 = vmatpush3.bf16.msra.mxu0 %v3012_v13 }
  0xe9   : > { %2811 = vmatpush3.bf16.msra.mxu1 %v3013_v14  ;;  %2792 = vmatprep.subr.bf16.mxu0 %v3136_v1 }
  0xea   : > { %2812 = vmatprep.subr.bf16.mxu1 %v3136_v1 }
  0xec   : > { %2793 = vmatpush3.bf16.msra.mxu0 %v3014_v15 }
  0xed   : > { %2813 = vmatpush3.bf16.msra.mxu1 %v3015_v16  ;;  %2794 = vmatprep.subr.bf16.mxu0 %v3136_v1 }
  0xee   : > { %2814 = vmatprep.subr.bf16.mxu1 %v3136_v1 }
  0xf0   : > { %2795 = vmatpush3.bf16.msra.mxu0 %v3016_v17 }
  0xf1   : > { %2815 = vmatpush3.bf16.msra.mxu1 %v3017_v19  ;;  %2796 = vmatprep.subr.bf16.mxu0 %v3136_v1 }
  0xf2   : > { %2816 = vmatprep.subr.bf16.mxu1 %v3136_v1 }
  0xf4   : > { %2797 = vmatpush3.bf16.msra.mxu0 %v3018_v21 }
  0xf5   : > { %2817 = vmatpush3.bf16.msra.mxu1 %v3019_v24  ;;  %2822 = vmatprep.subr.bf16.mxu0 %v3136_v1 }
  0xf7   : > { %v333_v29 = vpop.f32.mrf.mxu0  ;;  %2799 = vmatmul.mubr.bf16.vlgmr.msra.gmra.mxu0 %v1541_v26 }
  0xf8   : > { %v422_v30 = vpop.f32.mrf.mxu1  ;;  %2823 = vmatpush3.bf16.msra.mxu0 %v3020_v27  ;;  %2819 = vmatmul.mubr.bf16.vlgmr.msra.gmra.mxu1 %v1652_v28 }
  0xf9   : > { %v423_v62 = vadd.f32 %v422_v30, %v333_v29  ;;  %v2560_v32 = vpop.f32.mrf.mxu0  ;;  %2824 = vmatprep.subr.bf16.mxu0 %v3136_v1  ;;  %2838 = vmatprep.mubr.msk.bf16.mxu0 %vm3137_vm0, %v3136_v1 }
  0xfa   : > { %v2580_v0 = vpop.f32.mrf.mxu1 }
  0xfb   : > { %v336_v33 = vpop.f32.mrf.mxu0 }
  0xfc   : > { %v425_v34 = vpop.f32.mrf.mxu1  ;;  %2825 = vmatpush3.bf16.msra.mxu0 %v3021_v31 }
  0xfd   : > { %v426_v36 = vadd.f32 %v425_v34, %v336_v33  ;;  %v2561_v37 = vpop.f32.mrf.mxu0  ;;  %2826 = vmatprep.subr.bf16.mxu0 %v3136_v1 }
  0xfe   : > { %v2581_v38 = vpop.f32.mrf.mxu1 }
 0x100   : > { %2827 = vmatpush3.bf16.msra.mxu0 %v3022_v35 }
 0x101   : > { %2828 = vmatprep.subr.bf16.mxu0 %v3136_v1 }
 0x104   : > { %2829 = vmatpush3.bf16.msra.mxu0 %v3023_v39 }
 0x105   : > { %2830 = vmatprep.subr.bf16.mxu0 %v3136_v1 }
 0x108   : > { %2831 = vmatpush3.bf16.msra.mxu0 %v3024_v41 }
 0x109   : > { %2832 = vmatprep.subr.bf16.mxu0 %v3136_v1 }
 0x10c   : > { %2833 = vmatpush3.bf16.msra.mxu0 %v3025_v43 }
 0x10d   : > { %2834 = vmatprep.subr.bf16.mxu0 %v3136_v1 }
 0x110   : > { %2835 = vmatpush3.bf16.msra.mxu0 %v3026_v44 }
 0x111   : > { %2836 = vmatprep.subr.bf16.mxu0 %v3136_v1 }
 0x114   : > { %2837 = vmatpush3.bf16.msra.mxu0 %v3027_v45 }
 0x117   : > { %v531_v48 = vpop.f32.mrf.mxu0  ;;  %2839 = vmatmul.mubr.bf16.vlgmr.msra.gmra.mxu0 %v1763_v47 }
 0x118   : > { %v538_v49 = vadd.f32 %v531_v48, %v423_v62  ;;  %v642_v50 = vpop.f32.mrf.mxu1 }
 0x119   : > { %v2600_v51 = vpop.f32.mrf.mxu0 }
 0x11a   : > { %v649_v20 = vadd.f32 %v642_v50, %v538_v49  ;;  %v2620_v18 = vpop.f32.mrf.mxu1 }
 0x11b   : > { %v534_v52 = vpop.f32.mrf.mxu0 }
 0x11c   : > { %v539_v53 = vadd.f32 %v534_v52, %v426_v36  ;;  %v645_v54 = vpop.f32.mrf.mxu1 }
 0x11d   : > { %v2601_v55 = vpop.f32.mrf.mxu0 }
 0x11e   : > { %v650_v56 = vadd.f32 %v645_v54, %v539_v53  ;;  %v2621_v57 = vpop.f32.mrf.mxu1 }
 0x137   : > { %v753_v58 = vpop.f32.mrf.mxu0 }
 0x138   : > { %v760_v59 = vadd.f32 %v753_v58, %v649_v20  ;;  %v864_v60 = vpop.f32.mrf.mxu1 }
 0x139   : > { %v2640_v1 = vpop.f32.mrf.mxu0 }
 0x13a   : > { %v871_v61 = vadd.f32 %v864_v60, %v760_v59  ;;  %v2660_v23 = vpop.f32.mrf.mxu1 }
 0x13b   : > { %v756_v63 = vpop.f32.mrf.mxu0 }
 0x13c   : > { %v761_v2 = vadd.f32 %v756_v63, %v650_v56  ;;  %v867_v3 = vpop.f32.mrf.mxu1 }
 0x13d   : > { %v2641_v4 = vpop.f32.mrf.mxu0 }
 0x13e   : > { %v872_v5 = vadd.f32 %v867_v3, %v761_v2  ;;  %v2661_v6 = vpop.f32.mrf.mxu1 }
 0x157   : > { %v975_v7 = vpop.f32.mrf.mxu0 }
 0x158   : > { %v982_v8 = vadd.f32 %v975_v7, %v871_v61  ;;  %v1086_v40 = vpop.f32.mrf.mxu1 }
 0x159   : > { %v2680_v42 = vpop.f32.mrf.mxu0 }
 0x15a   : > { %v1093_v9 = vadd.f32 %v1086_v40, %v982_v8  ;;  %v2700_v10 = vpop.f32.mrf.mxu1 }
 0x15b   : > { %v978_v11 = vpop.f32.mrf.mxu0 }
 0x15c   : > { %v983_v12 = vadd.f32 %v978_v11, %v872_v5  ;;  %v1089_v13 = vpop.f32.mrf.mxu1 }
 0x15d   : > { %v2681_v14 = vpop.f32.mrf.mxu0 }
 0x15e   : > { %v1094_v15 = vadd.f32 %v1089_v13, %v983_v12  ;;  %v2701_v16 = vpop.f32.mrf.mxu1 }
 0x177   : > { %v1197_v17 = vpop.f32.mrf.mxu0 }
 0x178   : > { %v1204_v19 = vadd.f32 %v1197_v17, %v1093_v9  ;;  %v1308_v21 = vpop.f32.mrf.mxu1 }
 0x179   : > { %v2720_v22 = vpop.f32.mrf.mxu0 }
 0x17a   : > { %v1315_v24 = vadd.f32 %v1308_v21, %v1204_v19  ;;  %v2740_v25 = vpop.f32.mrf.mxu1 }
 0x17b   : > { %v1200_v26 = vpop.f32.mrf.mxu0 }
 0x17c   : > { %v1205_v27 = vadd.f32 %v1200_v26, %v1094_v15  ;;  %v1311_v28 = vpop.f32.mrf.mxu1 }
 0x17d   : > { %v2721_v29 = vpop.f32.mrf.mxu0 }
 0x17e   : > { %v1316_v30 = vadd.f32 %v1311_v28, %v1205_v27  ;;  %v2741_v31 = vpop.f32.mrf.mxu1 }
 0x197   : > { %v1419_v62 = vpop.f32.mrf.mxu0 }
 0x198   : > { %v1530_v32 = vpop.f32.mrf.mxu1  ;;  %v1426_v48 = vadd.f32 %v1419_v62, %v1315_v24 }
 0x199   : > { %v2760_v0 = vpop.f32.mrf.mxu0 }
 0x19a   : > { %v2780_v33 = vpop.f32.mrf.mxu1  ;;  %v1537_v49 = vadd.f32 %v1530_v32, %v1426_v48 }
 0x19b   : > { %v1422_v34 = vpop.f32.mrf.mxu0 }
 0x19c   : > { %v1533_v35 = vpop.f32.mrf.mxu1  ;;  %v1427_v50 = vadd.f32 %v1422_v34, %v1316_v30 }
 0x19d   : > { %v2761_v36 = vpop.f32.mrf.mxu0 }
 0x19e   : > { %v2781_v37 = vpop.f32.mrf.mxu1  ;;  %v1538_v20 = vadd.f32 %v1533_v35, %v1427_v50 }
 0x1b7   : > { %v1641_v38 = vpop.f32.mrf.mxu0 }
 0x1b8   : > { %v1752_v39 = vpop.f32.mrf.mxu1  ;;  %v1648_v51 = vadd.f32 %v1641_v38, %v1537_v49 }
 0x1b9   : > { %v2800_v41 = vpop.f32.mrf.mxu0 }
 0x1ba   : > { %v2820_v43 = vpop.f32.mrf.mxu1  ;;  %v1759_v18 = vadd.f32 %v1752_v39, %v1648_v51 }
 0x1bb   : > { %v1644_v44 = vpop.f32.mrf.mxu0 }
 0x1bc   : > { %v1755_v45 = vpop.f32.mrf.mxu1  ;;  %v1649_v52 = vadd.f32 %v1644_v44, %v1538_v20 }
 0x1bd   : > { %v2801_v46 = vpop.f32.mrf.mxu0 }
 0x1be   : > { %v2821_v47 = vpop.f32.mrf.mxu1  ;;  %v1760_v56 = vadd.f32 %v1755_v45, %v1649_v52 }
 0x1d7   : > { %v1863_v53 = vpop.f32.mrf.mxu0 }
 0x1d8   : > { %v1870_v54 = vadd.f32 %v1863_v53, %v1759_v18 }
 0x1d9   : > { %v2840_v55 = vpop.f32.mrf.mxu0 }
 0x1da   : > { %v1872_v57 = vsub.f32 1.0, %v1870_v54 }
 0x1db   : > { %v1866_v58 = vpop.f32.mrf.mxu0 }
 0x1dc   : > { %v1871_v59 = vadd.f32 %v1866_v58, %v1760_v56  ;;  %vm1874_vm2 = vcmp.lt.f32.partialorder %v1872_v57, 0.6  ;;  %1879 = vst.msk [vmem:[%s193_s30] sm:$0xff] %vm1878_vm1, %v1872_v57 }
 0x1dd   : > { %v2841_v60 = vpop.f32.mrf.mxu0  ;;  %v1876_v61 = vsel %vm1874_vm2, %v1872_v57, -inf }
 0x1de   : > { %v1873_v1 = vsub.f32 1.0, %v1871_v59  ;;  %v1881_v63 = vsel %vm1878_vm1, %v1876_v61, -inf }
 0x1e0   : > { %vm1875_vm3 = vcmp.lt.f32.partialorder %v1873_v1, 0.6  ;;  %1880 = vst.msk [vmem:[%s193_s30 + $0x8] sm:$0xff] %vm1878_vm1, %v1873_v1 }
 0x1e1   : > { %v1877_v23 = vsel %vm1875_vm3, %v1873_v1, -inf }
 0x1e2   : > { %v1882_v2 = vsel %vm1878_vm1, %v1877_v23, -inf }
 0x1e3   : > { %v1883_v3 = vmax.f32 %v1881_v63, %v1882_v2 }
 0x1e5   : > { %1884 = vmax.xlane.f32.xlu0 %v1883_v3 }
 0x1e6   : > { %3041 = shalt.err (!%p3038_p5)
}
 0x1e7   : > { %s3042_s23 = scalar_lea.hbm %s3793_s7, 256  ;;  %s3046_s28 = scalar_lea.hbm %s3868_s2, 512 }
 0x1e8   : > { %p3043_p6 = scmp.ne.s32.totalorder %s3793_s7, %s3042_s23  ;;  %p3047_p10 = scmp.lt.s32.totalorder %s3793_s7, %s3868_s2 }
 0x1e9   : > { %p3048_p11 = scmp.lt.s32.totalorder %s3046_s28, %s3042_s23 }
 0x1ea   : > { %p3044_p7 = pnand %p3043_p6, %p3202_p4 }
 0x1eb   : > { %p3049_p12 = por %p3048_p11, %p3047_p10 }
 0x1ec   : > { %p3045_p9 = pneg %p3044_p7 }
 0x1ee   : > { %p3050_p13 = pnand %p3049_p12, %p3045_p9 }
 0x1f0   : > { %3053 = shalt.err (!%p3050_p13)
}
 0x1f1   : > { %s3139_s4 = smov 128   ;;  %s3140_s5 = smov 8  }
 0x1f2   : > { %2844 = dma.vmem_to_hbm [thread:$0]  (%p3202_p4), %s3795_s8, 256, %s3793_s7, %s1896_s9, %s3139_s4, %s3139_s4, %s3140_s5  }
 0x1f3   : > { %s2051_s6 = sshll.u32 %s3786_s10, 3  ;;  %s2402_s19 = sshll.u32 %s3126_s15, 7 }
 0x1f4   : > { %s200_s11 = scalar_lea.vmem [#allocation4], %s2051_s6  ;;  %s1931_s21 = scalar_lea.hbm %s3869_s3, %s2402_s19 }
 0x1f5   : > { %s1933_s18 = sshll.u32 %s200_s11, 4  ;;  %s1901_s23 = scalar_lea.sflag [#allocation5], %s3786_s10  ;;  %s3822_s18 = int_to_ptr.vmem [resolvable:$true] %s1933_s18 }
 0x1f6   : > { %s3054_s26 = scalar_lea.vmem %s3822_s18, 128  ;;  %s3141_s27 = smov [#allocation4]  }
 0x1f7   : > { %p3055_p0 = scmp.ne.s32.totalorder %s3822_s18, %s3054_s26  ;;  %s3058_s15 = sshll.u32 %s3141_s27, 4  ;;  %s3059_s15 = int_to_ptr.vmem [resolvable:$false] %s3058_s15 }
 0x1f8   : > { %s3060_s28 = scalar_lea.vmem %s3059_s15, 256  ;;  %p3061_p3 = scmp.lt.s32.totalorder %s3822_s18, %s3059_s15 }
 0x1f9   : > { %p3056_p1 = pnand %p3055_p0, %p3202_p4  ;;  %p3062_p5 = scmp.lt.s32.totalorder %s3060_s28, %s3054_s26 }
 0x1fb   : > { %p3057_p2 = pneg %p3056_p1  ;;  %p3063_p6 = por %p3062_p5, %p3061_p3 }
 0x1fd   : > { %p3064_p7 = pnand %p3063_p6, %p3057_p2 }
 0x26e   : > { %v1885_v4 = vpop.xlane.xlu0 %1884 }
 0x26f   : > { %v1886_v5 = vrot.slane %v1885_v4, 4 }
 0x271   : > { %v1887_v6 = vmax.f32 %v1885_v4, %v1886_v5 }
 0x273   : > { %v1888_v7 = vrot.slane %v1887_v6, 2 }
 0x275   : > { %v1889_v8 = vmax.f32 %v1887_v6, %v1888_v7 }
 0x277   : > { %v1890_v40 = vrot.slane %v1889_v8, 1 }
 0x279   : > { %v1891_v42 = vmax.f32 %v1889_v8, %v1890_v40 }
 0x27b   : > { %2842 = vpush %v1891_v42 }
 0x2ac   : > { %s2843_s7 = spop %2842 }
 0x2ad   : > { %v1893_v9 = vstv %s2843_s7 }
 0x2ae   : > { %1894 = vst [vmem:[%s200_s11] sm:$0xff] %v1893_v9 }
 0x2af   : > { %3067 = shalt.err (!%p3064_p7)
}
 0x2b0   : > { %s3068_s29 = scalar_lea.hbm %s1931_s21, 128  ;;  %s3072_s4 = scalar_lea.hbm %s3869_s3, 256 }
 0x2b1   : > { %p3069_p9 = scmp.ne.s32.totalorder %s1931_s21, %s3068_s29  ;;  %p3073_p12 = scmp.lt.s32.totalorder %s1931_s21, %s3869_s3 }
 0x2b2   : > { %p3074_p13 = scmp.lt.s32.totalorder %s3072_s4, %s3068_s29 }
 0x2b3   : > { %p3070_p10 = pnand %p3069_p9, %p3202_p4 }
 0x2b4   : > { %p3075_p0 = por %p3074_p13, %p3073_p12 }
 0x2b5   : > { %p3071_p11 = pneg %p3070_p10 }
 0x2b7   : > { %p3076_p1 = pnand %p3075_p0, %p3071_p11 }
 0x2b9   : > { %3079 = shalt.err (!%p3076_p1)
}
 0x2ba   : > { %2845 = dma.vmem_to_hbm [thread:$0]  (%p3202_p4), %s3822_s18, 128, %s1931_s21, %s1901_s23  }
 0x2bb PF: > { %p2855_p2 = scmp.ge.s32.totalorder %s3134_s17, 2  ;;  %s1945_s11 = sand.u32 1, %s3114_s12  }
 0x2bc   : > { %s1946_s19 = scalar_lea.sflag [#allocation3], %s1945_s11 }
 0x2bd   : > { %p2849_p3 = pnand %p2855_p2, %p3209_p8 }
 0x2bf   : > { %p2850_p5 = pneg %p2849_p3 }
 0x2c1   : > { %3105 = dma.done.wait (%p2850_p5), %s1946_s19, 256  }
 0x2c2   : > { %3107 = vsyncadd (%p2850_p5), %s1946_s19, 4294967040  ;;  %s1955_s7 = scalar_lea.sflag [#allocation5], %s1945_s11 }
 0x2c3   : > { %3109 = dma.done.wait (%p2850_p5), %s1955_s7, 128  }
 0x2c4   : > { %3111 = vsyncadd (%p2850_p5), %s1955_s7, 4294967168  ;;  %s20_s17 = sadd.s32 1, %s3134_s17   ;;  %s3872_s12 = smov %s3118_s13 }
 0x2c5   : > { %p17_p6 = scmp.ge.s32.totalorder %s20_s17, 4   ;;  %s3873_s13 = smov %s3122_s14 }
 0x2c6   : > { %s3874_s14 = smov %s3215_s25  ;;  %s3875_s15 = smov %s3130_s16 }
 0x2c7   : > { %s3876_s16 = smov %s3878_s20  ;;  %19 = sbr.rel (!%p17_p6) target bundleno = 6 (0x6), region = 94 }
 0x2cc   :  { %1960 = vsyncpa [#allocation3], 1 }
 0x2cd   :  { %1962 = vsyncpa [#allocation3 + $0x1], 1 }
 0x2ce   :  { %1963 = vsyncpa [#allocation5], 1 }
 0x2cf   :  { %1965 = vsyncpa [#allocation5 + $0x1], 1 }

</bundles_post_ra>
